<compile_context>
chip_gen: v6e
topology: v6e:2x2x1
jax: 0.10.0
libtpu: 0.0.40
codegen_flags: <defaults>
</compile_context>

<pallas_src>
import functools
import math

import jax
import jax.numpy as jnp
from jax import lax
from jax.experimental import pallas as pl
from jax.experimental.pallas import tpu as pltpu


# ----------------------------------------------------------------------------
# Kernel: the full encoder stack; grid = (batch blocks, layers).
# ----------------------------------------------------------------------------
def _fused_encoder_kernel(
    x_ref,
    wq_ref, bq_ref, wk_ref, bk_ref, wv_ref, bv_ref, wo_ref, bo_ref,
    g1_ref, be1_ref,
    w1_ref, b1_ref, w2_ref, b2_ref,
    g2_ref, be2_ref,
    o_ref,
    h_scr,
    *, nhead: int, eps: float,
):
    l = pl.program_id(1)
    n_layers = pl.num_programs(1)

    TB, S, D = x_ref.shape
    R = TB * S
    hd = D // nhead
    scale = 1.0 / math.sqrt(hd)
    mxu_dtype = wq_ref.dtype          # bf16 by default; f32 on the verification path

    # Layer 0: load this batch block into the f32 residual-stream carry scratch.
    @pl.when(l == 0)
    def _():
        h_scr[...] = x_ref[...].reshape(R, D).astype(jnp.float32)

    x = h_scr[...]                    # [R, D] f32 residual stream (carried across layers)
    xm = x.astype(mxu_dtype)

    wq, wk, wv, wo = wq_ref[0], wk_ref[0], wv_ref[0], wo_ref[0]

    # --- QKV projections (low-precision MXU operands, f32 accumulation) ------
    q = jnp.dot(xm, wq, preferred_element_type=jnp.float32) + bq_ref[0]
    k = jnp.dot(xm, wk, preferred_element_type=jnp.float32) + bk_ref[0]
    v = jnp.dot(xm, wv, preferred_element_type=jnp.float32) + bv_ref[0]

    q_mx = (q * scale).astype(mxu_dtype)   # softmax scale hoisted out of the head loop
    k_mx = k.astype(mxu_dtype)
    v_mx = v.astype(mxu_dtype)

    # --- multi-head self-attention --------------------------------------------
    # Per-head matmuls are [S,hd]x[hd,S], [S,S]x[S,hd], [S,hd]x[hd,D]; the head output is
    # folded directly into the output projection (attn @ Wo == sum_h out_h @ Wo[h-rows]),
    # so no lane masks / lane concatenation and no nhead-fold FLOP inflation.
    # TODO(synk): for long sequences this should become a flash-style online-softmax loop
    #             over key tiles so the [S, S] scores never materialize in full.
    # TODO(synk): src_mask / src_key_padding_mask (additive / padding masks) not ported.
    per_batch = []
    for t in range(TB):
        r0 = t * S
        acc = jnp.zeros((S, D), jnp.float32)
        for h in range(nhead):
            c0 = h * hd
            qh = q_mx[r0:r0 + S, c0:c0 + hd]
            kh = k_mx[r0:r0 + S, c0:c0 + hd]
            vh = v_mx[r0:r0 + S, c0:c0 + hd]
            s = lax.dot_general(qh, kh, (((1,), (1,)), ((), ())),
                                preferred_element_type=jnp.float32)      # [S, S]
            s = s - jnp.max(s, axis=-1, keepdims=True)
            e = jnp.exp(s)
            den = jnp.sum(e, axis=-1, keepdims=True)
            inv = pl.reciprocal(den, approx=True)        # EUP slot (free when MXU-bound)
            inv = inv * (2.0 - den * inv)                # one Newton step -> ~f32 accuracy
            p = (e * inv).astype(mxu_dtype)
            oh = jnp.dot(p, vh, preferred_element_type=jnp.float32)      # [S, hd]
            acc = acc + jnp.dot(oh.astype(mxu_dtype), wo[c0:c0 + hd, :],
                                preferred_element_type=jnp.float32)      # [S, D]
        per_batch.append(acc)
    proj = per_batch[0] if TB == 1 else jnp.concatenate(per_batch, axis=0)
    proj = proj + bo_ref[0]                                              # [R, D]

    # --- residual + LayerNorm 1 (f32) ------------------------------------------
    h1 = x + proj
    mu1 = jnp.mean(h1, axis=-1, keepdims=True)
    var1 = jnp.mean(jnp.square(h1 - mu1), axis=-1, keepdims=True)
    h1 = (h1 - mu1) * lax.rsqrt(var1 + eps) * g1_ref[0] + be1_ref[0]

    # --- feed-forward: linear1 -> relu -> linear2 -------------------------------
    f = jnp.dot(h1.astype(mxu_dtype), w1_ref[0],
                preferred_element_type=jnp.float32) + b1_ref[0]
    f = jnp.maximum(f, 0.0)
    f = jnp.dot(f.astype(mxu_dtype), w2_ref[0],
                preferred_element_type=jnp.float32) + b2_ref[0]

    # --- residual + LayerNorm 2 (f32) -------------------------------------------
    h2 = h1 + f
    mu2 = jnp.mean(h2, axis=-1, keepdims=True)
    var2 = jnp.mean(jnp.square(h2 - mu2), axis=-1, keepdims=True)
    out = (h2 - mu2) * lax.rsqrt(var2 + eps) * g2_ref[0] + be2_ref[0]

    # Carry to the next layer in VMEM; write HBM only after the last layer.
    h_scr[...] = out

    @pl.when(l == n_layers - 1)
    def _():
        o_ref[...] = out.reshape(TB, S, D).astype(o_ref.dtype)


# ----------------------------------------------------------------------------
# Wrapper: one pallas_call for the whole stack.
# ----------------------------------------------------------------------------
def _pick_batch_block(B: int, S: int) -> int:
    """Largest divisor of B with <=512 rows per step, keeping >=2 parallel steps if possible."""
    tb = 1
    for cand in range(1, B + 1):
        if B % cand == 0 and cand * S <= 512:
            tb = cand
    if B // tb < 2:          # v7x dual-TC: keep >=2 steps on the parallel axis when possible
        for cand in range(tb - 1, 0, -1):
            if B % cand == 0:
                tb = cand
                break
    return max(tb, 1)


def my_transformer_encoder(src, layer_params, *, nhead,
                           mxu_dtype=jnp.bfloat16, eps: float = 1e-5):
    """MyTransformerEncoder.forward (norm=None, get_weight=False, masks=None).

    src: [seq, batch, d_model] (PyTorch seq-first layout). Returns [seq, batch, d_model].
    """
    x = jnp.transpose(src, (1, 0, 2))           # [B, S, D] — batch is the parallel grid axis
    B, S, D = x.shape
    L = len(layer_params)
    F = layer_params[0]["w1"].shape[1]
    dtype = x.dtype

    # Stack per-layer params along a leading layer axis; the big matmul weights go to the MXU
    # dtype (bf16 default: halves weight HBM traffic / VMEM residency); biases & LN params f32.
    def stack(name, cast=None):
        a = jnp.stack([p[name] for p in layer_params], axis=0)
        return a.astype(cast if cast is not None else jnp.float32)

    wq = stack("wq", mxu_dtype); wk = stack("wk", mxu_dtype); wv = stack("wv", mxu_dtype)
    wo = stack("wo", mxu_dtype); w1 = stack("w1", mxu_dtype); w2 = stack("w2", mxu_dtype)
    bq = stack("bq"); bk = stack("bk"); bv = stack("bv"); bo = stack("bo")
    b1 = stack("b1"); b2 = stack("b2")
    g1 = stack("g1"); be1 = stack("be1"); g2 = stack("g2"); be2 = stack("be2")

    TB = _pick_batch_block(B, S)
    n_blocks = B // TB

    # --- VMEM budget (portable across 64 MiB v7x / 128 MiB v5e-v6e parts) -------
    w_item = jnp.dtype(mxu_dtype).itemsize
    w_bytes = (4 * D * D + 2 * D * F) * w_item + (7 * D + F) * 4        # per-layer blocks
    x_bytes = TB * S * D * jnp.dtype(dtype).itemsize
    need = 2 * (2 * x_bytes + w_bytes) + TB * S * D * 4                 # dbl-buffered + carry
    try:
        vmem_cap = pltpu.get_tpu_info().vmem_capacity_bytes
    except Exception:
        vmem_cap = 64 * 1024 * 1024
    vmem_limit = int(min(0.75 * vmem_cap, max(4 * need, 48 * 1024 * 1024)))

    # Advisory cost estimate (matches the implemented FLOP count).
    flops = L * B * (8 * S * D * D + 4 * S * S * D + 4 * S * D * F)
    transcendentals = L * B * (nhead * S * S + nhead * S + 2 * S)
    param_bytes = int(sum(a.size * a.dtype.itemsize for a in
                          (wq, bq, wk, bk, wv, bv, wo, bo, g1, be1,
                           w1, b1, w2, b2, g2, be2)))
    bytes_accessed = 2 * int(x.size) * x.dtype.itemsize + n_blocks * param_bytes

    kernel = functools.partial(_fused_encoder_kernel, nhead=nhead, eps=eps)

    def xmap(b, l):                     # x / out: resident across the layer axis
        return (b, 0, 0)

    def wmap(b, l):                     # weights: streamed per layer step (pipelined)
        return (l, 0, 0)

    out = pl.pallas_call(
        kernel,
        out_shape=jax.ShapeDtypeStruct((B, S, D), dtype),
        grid_spec=pltpu.PrefetchScalarGridSpec(
            num_scalar_prefetch=0,
            grid=(n_blocks, L),
            in_specs=[
                pl.BlockSpec((TB, S, D), xmap),   # x
                pl.BlockSpec((1, D, D), wmap),    # wq
                pl.BlockSpec((1, 1, D), wmap),    # bq
                pl.BlockSpec((1, D, D), wmap),    # wk
                pl.BlockSpec((1, 1, D), wmap),    # bk
                pl.BlockSpec((1, D, D), wmap),    # wv
                pl.BlockSpec((1, 1, D), wmap),    # bv
                pl.BlockSpec((1, D, D), wmap),    # wo
                pl.BlockSpec((1, 1, D), wmap),    # bo
                pl.BlockSpec((1, 1, D), wmap),    # ln1 gamma
                pl.BlockSpec((1, 1, D), wmap),    # ln1 beta
                pl.BlockSpec((1, D, F), wmap),    # w1
                pl.BlockSpec((1, 1, F), wmap),    # b1
                pl.BlockSpec((1, F, D), wmap),    # w2
                pl.BlockSpec((1, 1, D), wmap),    # b2
                pl.BlockSpec((1, 1, D), wmap),    # ln2 gamma
                pl.BlockSpec((1, 1, D), wmap),    # ln2 beta
            ],
            out_specs=pl.BlockSpec((TB, S, D), xmap),
            scratch_shapes=[pltpu.VMEM((TB * S, D), jnp.float32)],   # residual-stream carry
        ),
        compiler_params=pltpu.CompilerParams(
            dimension_semantics=("parallel", "arbitrary"),
            vmem_limit_bytes=vmem_limit,
        ),
        cost_estimate=pl.CostEstimate(
            flops=int(flops),
            transcendentals=int(transcendentals),
            bytes_accessed=int(bytes_accessed),
        ),
    )(x, wq, bq, wk, bk, wv, bv, wo, bo, g1, be1, w1, b1, w2, b2, g2, be2)

    # TODO(synk): optional final `norm` (module default norm=None) and get_weight=True
    #             (returning the last layer's averaged attention weights) are not ported.
    # TODO(synk): when d_model < 128, a wrapper-side [B, S*D] lane-dense output slab would
    #             avoid masked partial stores on writeback.
    return jnp.transpose(out, (1, 0, 2))


# ----------------------------------------------------------------------------
# Parameter init (weights pre-transposed to [in, out]) and pure-JAX reference.
# ----------------------------------------------------------------------------
def init_encoder_layer_params(key, d_model, dim_feedforward, dtype=jnp.float32):
    ks = jax.random.split(key, 12)

    def lin(kw, kb, fan_in, fan_out):
        bound = 1.0 / math.sqrt(fan_in)
        w = jax.random.uniform(kw, (fan_in, fan_out), dtype, -bound, bound)
        b = jax.random.uniform(kb, (1, fan_out), dtype, -bound, bound)
        return w, b

    wq, bq = lin(ks[0], ks[1], d_model, d_model)
    wk, bk = lin(ks[2], ks[3], d_model, d_model)
    wv, bv = lin(ks[4], ks[5], d_model, d_model)
    wo, bo = lin(ks[6], ks[7], d_model, d_model)
    w1, b1 = lin(ks[8], ks[9], d_model, dim_feedforward)
    w2, b2 = lin(ks[10], ks[11], dim_feedforward, d_model)
    g1 = jnp.ones((1, d_model), dtype)
    be1 = jnp.zeros((1, d_model), dtype)
    g2 = jnp.ones((1, d_model), dtype)
    be2 = jnp.zeros((1, d_model), dtype)
    return dict(wq=wq, bq=bq, wk=wk, bk=bk, wv=wv, bv=bv, wo=wo, bo=bo,
                g1=g1, be1=be1, w1=w1, b1=b1, w2=w2, b2=b2, g2=g2, be2=be2)


def _ref_layer(x, p, nhead, eps=1e-5):
    B, S, D = x.shape
    hd = D // nhead

    q = x @ p["wq"] + p["bq"]
    k = x @ p["wk"] + p["bk"]
    v = x @ p["wv"] + p["bv"]

    def split(t):
        return t.reshape(B, S, nhead, hd).transpose(0, 2, 1, 3)

    q, k, v = split(q), split(k), split(v)
    s = jnp.einsum("bhqd,bhkd->bhqk", q, k) / math.sqrt(hd)
    a = jax.nn.softmax(s, axis=-1)
    o = jnp.einsum("bhqk,bhkd->bhqd", a, v).transpose(0, 2, 1, 3).reshape(B, S, D)
    o = o @ p["wo"] + p["bo"]

    def ln(t, g, b):
        mu = t.mean(-1, keepdims=True)
        var = ((t - mu) ** 2).mean(-1, keepdims=True)
        return (t - mu) * jax.lax.rsqrt(var + eps) * g + b

    h1 = ln(x + o, p["g1"], p["be1"])
    f = jax.nn.relu(h1 @ p["w1"] + p["b1"]) @ p["w2"] + p["b2"]
    return ln(h1 + f, p["g2"], p["be2"])


def _reference(src, layer_params, nhead):
    x = jnp.transpose(src, (1, 0, 2))
    for p in layer_params:
        x = _ref_layer(x, p, nhead)
    return jnp.transpose(x, (1, 0, 2))


if __name__ == "__main__":
    key = jax.random.PRNGKey(0)
    kx, kp = jax.random.split(key)

    seq, batch, d_model, nhead, dim_ff, num_layers = 8, 2, 32, 4, 64, 2
    src = jax.random.normal(kx, (seq, batch, d_model), jnp.float32)

    layer_keys = jax.random.split(kp, num_layers)
    layer_params = [init_encoder_layer_params(k, d_model, dim_ff) for k in layer_keys]

    ref = _reference(src, layer_params, nhead)

    # f32-operand path: validates the kernel structure tightly against the pure-JAX reference.
    out_f32 = jax.block_until_ready(
        my_transformer_encoder(src, layer_params, nhead=nhead, mxu_dtype=jnp.float32))
    assert out_f32.shape == (seq, batch, d_model)
    err32 = float(jnp.max(jnp.abs(out_f32 - ref)))
    assert jnp.allclose(out_f32, ref, atol=2e-3, rtol=2e-3), f"f32 path max err {err32}"

    # Default bf16-MXU-operand path (the performance configuration): looser tolerance.
    out_bf16 = jax.block_until_ready(
        my_transformer_encoder(src, layer_params, nhead=nhead))
    assert out_bf16.shape == (seq, batch, d_model)
    err16 = float(jnp.max(jnp.abs(out_bf16 - ref)))
    assert jnp.allclose(out_bf16, ref, atol=1e-1, rtol=1e-1), f"bf16 path max err {err16}"

    print("KERNEL_OK")
</pallas_src>

<mosaic_0001>
module attributes {stable_mosaic.version = 11 : i64} {
  func.func @_fused_encoder_kernel(%arg0: i32, %arg1: i32, %arg2: memref<1x8x32xf32, #tpu.memory_space<vmem>>, %arg3: memref<1x32x32xf32, #tpu.memory_space<vmem>>, %arg4: memref<1x1x32xf32, #tpu.memory_space<vmem>>, %arg5: memref<1x32x32xf32, #tpu.memory_space<vmem>>, %arg6: memref<1x1x32xf32, #tpu.memory_space<vmem>>, %arg7: memref<1x32x32xf32, #tpu.memory_space<vmem>>, %arg8: memref<1x1x32xf32, #tpu.memory_space<vmem>>, %arg9: memref<1x32x32xf32, #tpu.memory_space<vmem>>, %arg10: memref<1x1x32xf32, #tpu.memory_space<vmem>>, %arg11: memref<1x1x32xf32, #tpu.memory_space<vmem>>, %arg12: memref<1x1x32xf32, #tpu.memory_space<vmem>>, %arg13: memref<1x32x64xf32, #tpu.memory_space<vmem>>, %arg14: memref<1x1x64xf32, #tpu.memory_space<vmem>>, %arg15: memref<1x64x32xf32, #tpu.memory_space<vmem>>, %arg16: memref<1x1x32xf32, #tpu.memory_space<vmem>>, %arg17: memref<1x1x32xf32, #tpu.memory_space<vmem>>, %arg18: memref<1x1x32xf32, #tpu.memory_space<vmem>>, %arg19: memref<1x8x32xf32, #tpu.memory_space<vmem>>, %arg20: memref<8x32xf32, #tpu.memory_space<vmem>>) attributes {dimension_semantics = [#tpu.dimension_semantics<parallel>, #tpu.dimension_semantics<arbitrary>], iteration_bounds = array<i64: 2, 2>, scalar_prefetch = 0 : i64, scratch_operands = 1 : i64, tpu.core_type = #tpu.core_type<tc>, window_params = [{transform_indices = @transform_0, window_bounds = array<i64: 1, 8, 32>}, {transform_indices = @transform_1, window_bounds = array<i64: 1, 32, 32>}, {transform_indices = @transform_2, window_bounds = array<i64: 1, 1, 32>}, {transform_indices = @transform_3, window_bounds = array<i64: 1, 32, 32>}, {transform_indices = @transform_4, window_bounds = array<i64: 1, 1, 32>}, {transform_indices = @transform_5, window_bounds = array<i64: 1, 32, 32>}, {transform_indices = @transform_6, window_bounds = array<i64: 1, 1, 32>}, {transform_indices = @transform_7, window_bounds = array<i64: 1, 32, 32>}, {transform_indices = @transform_8, window_bounds = array<i64: 1, 1, 32>}, {transform_indices = @transform_9, window_bounds = array<i64: 1, 1, 32>}, {transform_indices = @transform_10, window_bounds = array<i64: 1, 1, 32>}, {transform_indices = @transform_11, window_bounds = array<i64: 1, 32, 64>}, {transform_indices = @transform_12, window_bounds = array<i64: 1, 1, 64>}, {transform_indices = @transform_13, window_bounds = array<i64: 1, 64, 32>}, {transform_indices = @transform_14, window_bounds = array<i64: 1, 1, 32>}, {transform_indices = @transform_15, window_bounds = array<i64: 1, 1, 32>}, {transform_indices = @transform_16, window_bounds = array<i64: 1, 1, 32>}, {transform_indices = @transform_17, window_bounds = array<i64: 1, 8, 32>}]} {
    %c0_i32 = arith.constant 0 : i32
    %0 = arith.cmpi eq, %arg1, %c0_i32 : i32
    %1 = arith.extui %0 : i1 to i32
    %c0_i32_0 = arith.constant 0 : i32
    %2 = arith.cmpi ne, %1, %c0_i32_0 : i32
    scf.if %2 {
      %c0_94 = arith.constant 0 : index
      %c0_95 = arith.constant 0 : index
      %c0_96 = arith.constant 0 : index
      %196 = vector.load %arg2[%c0_94, %c0_95, %c0_96] : memref<1x8x32xf32, #tpu.memory_space<vmem>>, vector<1x8x32xf32>
      %197 = vector.shape_cast %196 : vector<1x8x32xf32> to vector<8x32xf32>
      %c0_97 = arith.constant 0 : index
      %c0_98 = arith.constant 0 : index
      %198 = vector.load %arg20[%c0_97, %c0_98] : memref<8x32xf32, #tpu.memory_space<vmem>>, vector<8x32xf32>
      tpu.vector_store %arg20[%c0_97, %c0_98], %197 {strides = array<i32>} : memref<8x32xf32, #tpu.memory_space<vmem>>, vector<8x32xf32>,
    } else {
    }
    %c0 = arith.constant 0 : index
    %c0_1 = arith.constant 0 : index
    %3 = vector.load %arg20[%c0, %c0_1] : memref<8x32xf32, #tpu.memory_space<vmem>>, vector<8x32xf32>
    %c0_2 = arith.constant 0 : index
    %c0_3 = arith.constant 0 : index
    %c0_4 = arith.constant 0 : index
    %4 = vector.load %arg3[%c0_2, %c0_3, %c0_4] : memref<1x32x32xf32, #tpu.memory_space<vmem>>, vector<1x32x32xf32>
    %5 = vector.shape_cast %4 : vector<1x32x32xf32> to vector<32x32xf32>
    %c0_5 = arith.constant 0 : index
    %c0_6 = arith.constant 0 : index
    %c0_7 = arith.constant 0 : index
    %6 = vector.load %arg5[%c0_5, %c0_6, %c0_7] : memref<1x32x32xf32, #tpu.memory_space<vmem>>, vector<1x32x32xf32>
    %7 = vector.shape_cast %6 : vector<1x32x32xf32> to vector<32x32xf32>
    %c0_8 = arith.constant 0 : index
    %c0_9 = arith.constant 0 : index
    %c0_10 = arith.constant 0 : index
    %8 = vector.load %arg7[%c0_8, %c0_9, %c0_10] : memref<1x32x32xf32, #tpu.memory_space<vmem>>, vector<1x32x32xf32>
    %9 = vector.shape_cast %8 : vector<1x32x32xf32> to vector<32x32xf32>
    %c0_11 = arith.constant 0 : index
    %c0_12 = arith.constant 0 : index
    %c0_13 = arith.constant 0 : index
    %10 = vector.load %arg9[%c0_11, %c0_12, %c0_13] : memref<1x32x32xf32, #tpu.memory_space<vmem>>, vector<1x32x32xf32>
    %11 = vector.shape_cast %10 : vector<1x32x32xf32> to vector<32x32xf32>
    %cst = arith.constant dense<0.000000e+00> : vector<8x32xf32>
    %12 = tpu.matmul %3, %5, %cst {dimension_numbers = #tpu.dot_dimension_numbers<[1], [0], [0], [1], [0, 0, 1, 1], [], []>} : vector<8x32xf32>, vector<32x32xf32>, vector<8x32xf32> -> vector<8x32xf32>
    %c0_14 = arith.constant 0 : index
    %c0_15 = arith.constant 0 : index
    %c0_16 = arith.constant 0 : index
    %13 = vector.load %arg4[%c0_14, %c0_15, %c0_16] : memref<1x1x32xf32, #tpu.memory_space<vmem>>, vector<1x1x32xf32>
    %14 = vector.shape_cast %13 : vector<1x1x32xf32> to vector<1x32xf32>
    %15 = vector.broadcast %14 : vector<1x32xf32> to vector<8x32xf32>
    %16 = arith.addf %12, %15 : vector<8x32xf32>
    %cst_17 = arith.constant dense<0.000000e+00> : vector<8x32xf32>
    %17 = tpu.matmul %3, %7, %cst_17 {dimension_numbers = #tpu.dot_dimension_numbers<[1], [0], [0], [1], [0, 0, 1, 1], [], []>} : vector<8x32xf32>, vector<32x32xf32>, vector<8x32xf32> -> vector<8x32xf32>
    %c0_18 = arith.constant 0 : index
    %c0_19 = arith.constant 0 : index
    %c0_20 = arith.constant 0 : index
    %18 = vector.load %arg6[%c0_18, %c0_19, %c0_20] : memref<1x1x32xf32, #tpu.memory_space<vmem>>, vector<1x1x32xf32>
    %19 = vector.shape_cast %18 : vector<1x1x32xf32> to vector<1x32xf32>
    %20 = vector.broadcast %19 : vector<1x32xf32> to vector<8x32xf32>
    %21 = arith.addf %17, %20 : vector<8x32xf32>
    %cst_21 = arith.constant dense<0.000000e+00> : vector<8x32xf32>
    %22 = tpu.matmul %3, %9, %cst_21 {dimension_numbers = #tpu.dot_dimension_numbers<[1], [0], [0], [1], [0, 0, 1, 1], [], []>} : vector<8x32xf32>, vector<32x32xf32>, vector<8x32xf32> -> vector<8x32xf32>
    %c0_22 = arith.constant 0 : index
    %c0_23 = arith.constant 0 : index
    %c0_24 = arith.constant 0 : index
    %23 = vector.load %arg8[%c0_22, %c0_23, %c0_24] : memref<1x1x32xf32, #tpu.memory_space<vmem>>, vector<1x1x32xf32>
    %24 = vector.shape_cast %23 : vector<1x1x32xf32> to vector<1x32xf32>
    %25 = vector.broadcast %24 : vector<1x32xf32> to vector<8x32xf32>
    %26 = arith.addf %22, %25 : vector<8x32xf32>
    %cst_25 = arith.constant 0.353553385 : f32
    %27 = vector.broadcast %cst_25 : f32 to vector<8x32xf32>
    %28 = arith.mulf %16, %27 : vector<8x32xf32>
    %cst_26 = arith.constant 0.000000e+00 : f32
    %29 = vector.broadcast %cst_26 : f32 to vector<8x32xf32>
    %30 = vector.extract_strided_slice %28 {offsets = [0, 0], sizes = [8, 8], strides = [1, 1]} : vector<8x32xf32> to vector<8x8xf32>
    %31 = vector.extract_strided_slice %21 {offsets = [0, 0], sizes = [8, 8], strides = [1, 1]} : vector<8x32xf32> to vector<8x8xf32>
    %32 = vector.extract_strided_slice %26 {offsets = [0, 0], sizes = [8, 8], strides = [1, 1]} : vector<8x32xf32> to vector<8x8xf32>
    %cst_27 = arith.constant dense<0.000000e+00> : vector<8x8xf32>
    %33 = tpu.matmul %30, %31, %cst_27 {dimension_numbers = #tpu.dot_dimension_numbers<[1], [1], [0], [0], [0, 0, 1, 0], [], []>} : vector<8x8xf32>, vector<8x8xf32>, vector<8x8xf32> -> vector<8x8xf32>
    %cst_28 = arith.constant dense<0xFF800000> : vector<8xf32>
    %34 = vector.multi_reduction <maximumf>, %33, %cst_28 [1] : vector<8x8xf32> to vector<8xf32>
    %35 = vector.shape_cast %34 : vector<8xf32> to vector<8x1xf32>
    %36 = vector.broadcast %35 : vector<8x1xf32> to vector<8x8xf32>
    %37 = arith.subf %33, %36 : vector<8x8xf32>
    %38 = math.exp %37 : vector<8x8xf32>
    %cst_29 = arith.constant dense<0.000000e+00> : vector<8xf32>
    %39 = vector.multi_reduction <add>, %38, %cst_29 [1] : vector<8x8xf32> to vector<8xf32>
    %40 = vector.shape_cast %39 : vector<8xf32> to vector<8x1xf32>
    %41 = tpu.reciprocal %40 {approx = true} : vector<8x1xf32> -> vector<8x1xf32>
    %42 = arith.mulf %40, %41 : vector<8x1xf32>
    %cst_30 = arith.constant 2.000000e+00 : f32
    %43 = vector.broadcast %cst_30 : f32 to vector<8x1xf32>
    %44 = arith.subf %43, %42 : vector<8x1xf32>
    %45 = arith.mulf %41, %44 : vector<8x1xf32>
    %46 = vector.broadcast %45 : vector<8x1xf32> to vector<8x8xf32>
    %47 = arith.mulf %38, %46 : vector<8x8xf32>
    %cst_31 = arith.constant dense<0.000000e+00> : vector<8x8xf32>
    %48 = tpu.matmul %47, %32, %cst_31 {dimension_numbers = #tpu.dot_dimension_numbers<[1], [0], [0], [1], [0, 0, 1, 1], [], []>} : vector<8x8xf32>, vector<8x8xf32>, vector<8x8xf32> -> vector<8x8xf32>
    %49 = vector.extract_strided_slice %11 {offsets = [0, 0], sizes = [8, 32], strides = [1, 1]} : vector<32x32xf32> to vector<8x32xf32>
    %cst_32 = arith.constant dense<0.000000e+00> : vector<8x32xf32>
    %50 = tpu.matmul %48, %49, %cst_32 {dimension_numbers = #tpu.dot_dimension_numbers<[1], [0], [0], [1], [0, 0, 1, 1], [], []>} : vector<8x8xf32>, vector<8x32xf32>, vector<8x32xf32> -> vector<8x32xf32>
    %51 = arith.addf %29, %50 : vector<8x32xf32>
    %52 = vector.extract_strided_slice %28 {offsets = [0, 8], sizes = [8, 8], strides = [1, 1]} : vector<8x32xf32> to vector<8x8xf32>
    %53 = vector.extract_strided_slice %21 {offsets = [0, 8], sizes = [8, 8], strides = [1, 1]} : vector<8x32xf32> to vector<8x8xf32>
    %54 = vector.extract_strided_slice %26 {offsets = [0, 8], sizes = [8, 8], strides = [1, 1]} : vector<8x32xf32> to vector<8x8xf32>
    %cst_33 = arith.constant dense<0.000000e+00> : vector<8x8xf32>
    %55 = tpu.matmul %52, %53, %cst_33 {dimension_numbers = #tpu.dot_dimension_numbers<[1], [1], [0], [0], [0, 0, 1, 0], [], []>} : vector<8x8xf32>, vector<8x8xf32>, vector<8x8xf32> -> vector<8x8xf32>
    %cst_34 = arith.constant dense<0xFF800000> : vector<8xf32>
    %56 = vector.multi_reduction <maximumf>, %55, %cst_34 [1] : vector<8x8xf32> to vector<8xf32>
    %57 = vector.shape_cast %56 : vector<8xf32> to vector<8x1xf32>
    %58 = vector.broadcast %57 : vector<8x1xf32> to vector<8x8xf32>
    %59 = arith.subf %55, %58 : vector<8x8xf32>
    %60 = math.exp %59 : vector<8x8xf32>
    %cst_35 = arith.constant dense<0.000000e+00> : vector<8xf32>
    %61 = vector.multi_reduction <add>, %60, %cst_35 [1] : vector<8x8xf32> to vector<8xf32>
    %62 = vector.shape_cast %61 : vector<8xf32> to vector<8x1xf32>
    %63 = tpu.reciprocal %62 {approx = true} : vector<8x1xf32> -> vector<8x1xf32>
    %64 = arith.mulf %62, %63 : vector<8x1xf32>
    %cst_36 = arith.constant 2.000000e+00 : f32
    %65 = vector.broadcast %cst_36 : f32 to vector<8x1xf32>
    %66 = arith.subf %65, %64 : vector<8x1xf32>
    %67 = arith.mulf %63, %66 : vector<8x1xf32>
    %68 = vector.broadcast %67 : vector<8x1xf32> to vector<8x8xf32>
    %69 = arith.mulf %60, %68 : vector<8x8xf32>
    %cst_37 = arith.constant dense<0.000000e+00> : vector<8x8xf32>
    %70 = tpu.matmul %69, %54, %cst_37 {dimension_numbers = #tpu.dot_dimension_numbers<[1], [0], [0], [1], [0, 0, 1, 1], [], []>} : vector<8x8xf32>, vector<8x8xf32>, vector<8x8xf32> -> vector<8x8xf32>
    %71 = vector.extract_strided_slice %11 {offsets = [8, 0], sizes = [8, 32], strides = [1, 1]} : vector<32x32xf32> to vector<8x32xf32>
    %cst_38 = arith.constant dense<0.000000e+00> : vector<8x32xf32>
    %72 = tpu.matmul %70, %71, %cst_38 {dimension_numbers = #tpu.dot_dimension_numbers<[1], [0], [0], [1], [0, 0, 1, 1], [], []>} : vector<8x8xf32>, vector<8x32xf32>, vector<8x32xf32> -> vector<8x32xf32>
    %73 = arith.addf %51, %72 : vector<8x32xf32>
    %74 = vector.extract_strided_slice %28 {offsets = [0, 16], sizes = [8, 8], strides = [1, 1]} : vector<8x32xf32> to vector<8x8xf32>
    %75 = vector.extract_strided_slice %21 {offsets = [0, 16], sizes = [8, 8], strides = [1, 1]} : vector<8x32xf32> to vector<8x8xf32>
    %76 = vector.extract_strided_slice %26 {offsets = [0, 16], sizes = [8, 8], strides = [1, 1]} : vector<8x32xf32> to vector<8x8xf32>
    %cst_39 = arith.constant dense<0.000000e+00> : vector<8x8xf32>
    %77 = tpu.matmul %74, %75, %cst_39 {dimension_numbers = #tpu.dot_dimension_numbers<[1], [1], [0], [0], [0, 0, 1, 0], [], []>} : vector<8x8xf32>, vector<8x8xf32>, vector<8x8xf32> -> vector<8x8xf32>
    %cst_40 = arith.constant dense<0xFF800000> : vector<8xf32>
    %78 = vector.multi_reduction <maximumf>, %77, %cst_40 [1] : vector<8x8xf32> to vector<8xf32>
    %79 = vector.shape_cast %78 : vector<8xf32> to vector<8x1xf32>
    %80 = vector.broadcast %79 : vector<8x1xf32> to vector<8x8xf32>
    %81 = arith.subf %77, %80 : vector<8x8xf32>
    %82 = math.exp %81 : vector<8x8xf32>
    %cst_41 = arith.constant dense<0.000000e+00> : vector<8xf32>
    %83 = vector.multi_reduction <add>, %82, %cst_41 [1] : vector<8x8xf32> to vector<8xf32>
    %84 = vector.shape_cast %83 : vector<8xf32> to vector<8x1xf32>
    %85 = tpu.reciprocal %84 {approx = true} : vector<8x1xf32> -> vector<8x1xf32>
    %86 = arith.mulf %84, %85 : vector<8x1xf32>
    %cst_42 = arith.constant 2.000000e+00 : f32
    %87 = vector.broadcast %cst_42 : f32 to vector<8x1xf32>
    %88 = arith.subf %87, %86 : vector<8x1xf32>
    %89 = arith.mulf %85, %88 : vector<8x1xf32>
    %90 = vector.broadcast %89 : vector<8x1xf32> to vector<8x8xf32>
    %91 = arith.mulf %82, %90 : vector<8x8xf32>
    %cst_43 = arith.constant dense<0.000000e+00> : vector<8x8xf32>
    %92 = tpu.matmul %91, %76, %cst_43 {dimension_numbers = #tpu.dot_dimension_numbers<[1], [0], [0], [1], [0, 0, 1, 1], [], []>} : vector<8x8xf32>, vector<8x8xf32>, vector<8x8xf32> -> vector<8x8xf32>
    %93 = vector.extract_strided_slice %11 {offsets = [16, 0], sizes = [8, 32], strides = [1, 1]} : vector<32x32xf32> to vector<8x32xf32>
    %cst_44 = arith.constant dense<0.000000e+00> : vector<8x32xf32>
    %94 = tpu.matmul %92, %93, %cst_44 {dimension_numbers = #tpu.dot_dimension_numbers<[1], [0], [0], [1], [0, 0, 1, 1], [], []>} : vector<8x8xf32>, vector<8x32xf32>, vector<8x32xf32> -> vector<8x32xf32>
    %95 = arith.addf %73, %94 : vector<8x32xf32>
    %96 = vector.extract_strided_slice %28 {offsets = [0, 24], sizes = [8, 8], strides = [1, 1]} : vector<8x32xf32> to vector<8x8xf32>
    %97 = vector.extract_strided_slice %21 {offsets = [0, 24], sizes = [8, 8], strides = [1, 1]} : vector<8x32xf32> to vector<8x8xf32>
    %98 = vector.extract_strided_slice %26 {offsets = [0, 24], sizes = [8, 8], strides = [1, 1]} : vector<8x32xf32> to vector<8x8xf32>
    %cst_45 = arith.constant dense<0.000000e+00> : vector<8x8xf32>
    %99 = tpu.matmul %96, %97, %cst_45 {dimension_numbers = #tpu.dot_dimension_numbers<[1], [1], [0], [0], [0, 0, 1, 0], [], []>} : vector<8x8xf32>, vector<8x8xf32>, vector<8x8xf32> -> vector<8x8xf32>
    %cst_46 = arith.constant dense<0xFF800000> : vector<8xf32>
    %100 = vector.multi_reduction <maximumf>, %99, %cst_46 [1] : vector<8x8xf32> to vector<8xf32>
    %101 = vector.shape_cast %100 : vector<8xf32> to vector<8x1xf32>
    %102 = vector.broadcast %101 : vector<8x1xf32> to vector<8x8xf32>
    %103 = arith.subf %99, %102 : vector<8x8xf32>
    %104 = math.exp %103 : vector<8x8xf32>
    %cst_47 = arith.constant dense<0.000000e+00> : vector<8xf32>
    %105 = vector.multi_reduction <add>, %104, %cst_47 [1] : vector<8x8xf32> to vector<8xf32>
    %106 = vector.shape_cast %105 : vector<8xf32> to vector<8x1xf32>
    %107 = tpu.reciprocal %106 {approx = true} : vector<8x1xf32> -> vector<8x1xf32>
    %108 = arith.mulf %106, %107 : vector<8x1xf32>
    %cst_48 = arith.constant 2.000000e+00 : f32
    %109 = vector.broadcast %cst_48 : f32 to vector<8x1xf32>
    %110 = arith.subf %109, %108 : vector<8x1xf32>
    %111 = arith.mulf %107, %110 : vector<8x1xf32>
    %112 = vector.broadcast %111 : vector<8x1xf32> to vector<8x8xf32>
    %113 = arith.mulf %104, %112 : vector<8x8xf32>
    %cst_49 = arith.constant dense<0.000000e+00> : vector<8x8xf32>
    %114 = tpu.matmul %113, %98, %cst_49 {dimension_numbers = #tpu.dot_dimension_numbers<[1], [0], [0], [1], [0, 0, 1, 1], [], []>} : vector<8x8xf32>, vector<8x8xf32>, vector<8x8xf32> -> vector<8x8xf32>
    %115 = vector.extract_strided_slice %11 {offsets = [24, 0], sizes = [8, 32], strides = [1, 1]} : vector<32x32xf32> to vector<8x32xf32>
    %cst_50 = arith.constant dense<0.000000e+00> : vector<8x32xf32>
    %116 = tpu.matmul %114, %115, %cst_50 {dimension_numbers = #tpu.dot_dimension_numbers<[1], [0], [0], [1], [0, 0, 1, 1], [], []>} : vector<8x8xf32>, vector<8x32xf32>, vector<8x32xf32> -> vector<8x32xf32>
    %117 = arith.addf %95, %116 : vector<8x32xf32>
    %c0_51 = arith.constant 0 : index
    %c0_52 = arith.constant 0 : index
    %c0_53 = arith.constant 0 : index
    %118 = vector.load %arg10[%c0_51, %c0_52, %c0_53] : memref<1x1x32xf32, #tpu.memory_space<vmem>>, vector<1x1x32xf32>
    %119 = vector.shape_cast %118 : vector<1x1x32xf32> to vector<1x32xf32>
    %120 = vector.broadcast %119 : vector<1x32xf32> to vector<8x32xf32>
    %121 = arith.addf %117, %120 : vector<8x32xf32>
    %122 = arith.addf %3, %121 : vector<8x32xf32>
    %cst_54 = arith.constant dense<0.000000e+00> : vector<8xf32>
    %123 = vector.multi_reduction <add>, %122, %cst_54 [1] : vector<8x32xf32> to vector<8xf32>
    %124 = vector.shape_cast %123 : vector<8xf32> to vector<8x1xf32>
    %cst_55 = arith.constant 3.200000e+01 : f32
    %125 = vector.broadcast %cst_55 : f32 to vector<8x1xf32>
    %126 = arith.divf %124, %125 : vector<8x1xf32>
    %127 = vector.broadcast %126 : vector<8x1xf32> to vector<8x32xf32>
    %128 = arith.subf %122, %127 : vector<8x32xf32>
    %129 = arith.mulf %128, %128 : vector<8x32xf32>
    %cst_56 = arith.constant dense<0.000000e+00> : vector<8xf32>
    %130 = vector.multi_reduction <add>, %129, %cst_56 [1] : vector<8x32xf32> to vector<8xf32>
    %131 = vector.shape_cast %130 : vector<8xf32> to vector<8x1xf32>
    %cst_57 = arith.constant 3.200000e+01 : f32
    %132 = vector.broadcast %cst_57 : f32 to vector<8x1xf32>
    %133 = arith.divf %131, %132 : vector<8x1xf32>
    %134 = vector.broadcast %126 : vector<8x1xf32> to vector<8x32xf32>
    %135 = arith.subf %122, %134 : vector<8x32xf32>
    %cst_58 = arith.constant 9.99999974E-6 : f32
    %136 = vector.broadcast %cst_58 : f32 to vector<8x1xf32>
    %137 = arith.addf %133, %136 : vector<8x1xf32>
    %138 = math.rsqrt %137 : vector<8x1xf32>
    %139 = vector.broadcast %138 : vector<8x1xf32> to vector<8x32xf32>
    %140 = arith.mulf %135, %139 : vector<8x32xf32>
    %c0_59 = arith.constant 0 : index
    %c0_60 = arith.constant 0 : index
    %c0_61 = arith.constant 0 : index
    %141 = vector.load %arg11[%c0_59, %c0_60, %c0_61] : memref<1x1x32xf32, #tpu.memory_space<vmem>>, vector<1x1x32xf32>
    %142 = vector.shape_cast %141 : vector<1x1x32xf32> to vector<1x32xf32>
    %143 = vector.broadcast %142 : vector<1x32xf32> to vector<8x32xf32>
    %144 = arith.mulf %140, %143 : vector<8x32xf32>
    %c0_62 = arith.constant 0 : index
    %c0_63 = arith.constant 0 : index
    %c0_64 = arith.constant 0 : index
    %145 = vector.load %arg12[%c0_62, %c0_63, %c0_64] : memref<1x1x32xf32, #tpu.memory_space<vmem>>, vector<1x1x32xf32>
    %146 = vector.shape_cast %145 : vector<1x1x32xf32> to vector<1x32xf32>
    %147 = vector.broadcast %146 : vector<1x32xf32> to vector<8x32xf32>
    %148 = arith.addf %144, %147 : vector<8x32xf32>
    %c0_65 = arith.constant 0 : index
    %c0_66 = arith.constant 0 : index
    %c0_67 = arith.constant 0 : index
    %149 = vector.load %arg13[%c0_65, %c0_66, %c0_67] : memref<1x32x64xf32, #tpu.memory_space<vmem>>, vector<1x32x64xf32>
    %150 = vector.shape_cast %149 : vector<1x32x64xf32> to vector<32x64xf32>
    %cst_68 = arith.constant dense<0.000000e+00> : vector<8x64xf32>
    %151 = tpu.matmul %148, %150, %cst_68 {dimension_numbers = #tpu.dot_dimension_numbers<[1], [0], [0], [1], [0, 0, 1, 1], [], []>} : vector<8x32xf32>, vector<32x64xf32>, vector<8x64xf32> -> vector<8x64xf32>
    %c0_69 = arith.constant 0 : index
    %c0_70 = arith.constant 0 : index
    %c0_71 = arith.constant 0 : index
    %152 = vector.load %arg14[%c0_69, %c0_70, %c0_71] : memref<1x1x64xf32, #tpu.memory_space<vmem>>, vector<1x1x64xf32>
    %153 = vector.shape_cast %152 : vector<1x1x64xf32> to vector<1x64xf32>
    %154 = vector.broadcast %153 : vector<1x64xf32> to vector<8x64xf32>
    %155 = arith.addf %151, %154 : vector<8x64xf32>
    %cst_72 = arith.constant 0.000000e+00 : f32
    %156 = vector.broadcast %cst_72 : f32 to vector<8x64xf32>
    %157 = arith.maximumf %155, %156 : vector<8x64xf32>
    %c0_73 = arith.constant 0 : index
    %c0_74 = arith.constant 0 : index
    %c0_75 = arith.constant 0 : index
    %158 = vector.load %arg15[%c0_73, %c0_74, %c0_75] : memref<1x64x32xf32, #tpu.memory_space<vmem>>, vector<1x64x32xf32>
    %159 = vector.shape_cast %158 : vector<1x64x32xf32> to vector<64x32xf32>
    %cst_76 = arith.constant dense<0.000000e+00> : vector<8x32xf32>
    %160 = tpu.matmul %157, %159, %cst_76 {dimension_numbers = #tpu.dot_dimension_numbers<[1], [0], [0], [1], [0, 0, 1, 1], [], []>} : vector<8x64xf32>, vector<64x32xf32>, vector<8x32xf32> -> vector<8x32xf32>
    %c0_77 = arith.constant 0 : index
    %c0_78 = arith.constant 0 : index
    %c0_79 = arith.constant 0 : index
    %161 = vector.load %arg16[%c0_77, %c0_78, %c0_79] : memref<1x1x32xf32, #tpu.memory_space<vmem>>, vector<1x1x32xf32>
    %162 = vector.shape_cast %161 : vector<1x1x32xf32> to vector<1x32xf32>
    %163 = vector.broadcast %162 : vector<1x32xf32> to vector<8x32xf32>
    %164 = arith.addf %160, %163 : vector<8x32xf32>
    %165 = arith.addf %148, %164 : vector<8x32xf32>
    %cst_80 = arith.constant dense<0.000000e+00> : vector<8xf32>
    %166 = vector.multi_reduction <add>, %165, %cst_80 [1] : vector<8x32xf32> to vector<8xf32>
    %167 = vector.shape_cast %166 : vector<8xf32> to vector<8x1xf32>
    %cst_81 = arith.constant 3.200000e+01 : f32
    %168 = vector.broadcast %cst_81 : f32 to vector<8x1xf32>
    %169 = arith.divf %167, %168 : vector<8x1xf32>
    %170 = vector.broadcast %169 : vector<8x1xf32> to vector<8x32xf32>
    %171 = arith.subf %165, %170 : vector<8x32xf32>
    %172 = arith.mulf %171, %171 : vector<8x32xf32>
    %cst_82 = arith.constant dense<0.000000e+00> : vector<8xf32>
    %173 = vector.multi_reduction <add>, %172, %cst_82 [1] : vector<8x32xf32> to vector<8xf32>
    %174 = vector.shape_cast %173 : vector<8xf32> to vector<8x1xf32>
    %cst_83 = arith.constant 3.200000e+01 : f32
    %175 = vector.broadcast %cst_83 : f32 to vector<8x1xf32>
    %176 = arith.divf %174, %175 : vector<8x1xf32>
    %177 = vector.broadcast %169 : vector<8x1xf32> to vector<8x32xf32>
    %178 = arith.subf %165, %177 : vector<8x32xf32>
    %cst_84 = arith.constant 9.99999974E-6 : f32
    %179 = vector.broadcast %cst_84 : f32 to vector<8x1xf32>
    %180 = arith.addf %176, %179 : vector<8x1xf32>
    %181 = math.rsqrt %180 : vector<8x1xf32>
    %182 = vector.broadcast %181 : vector<8x1xf32> to vector<8x32xf32>
    %183 = arith.mulf %178, %182 : vector<8x32xf32>
    %c0_85 = arith.constant 0 : index
    %c0_86 = arith.constant 0 : index
    %c0_87 = arith.constant 0 : index
    %184 = vector.load %arg17[%c0_85, %c0_86, %c0_87] : memref<1x1x32xf32, #tpu.memory_space<vmem>>, vector<1x1x32xf32>
    %185 = vector.shape_cast %184 : vector<1x1x32xf32> to vector<1x32xf32>
    %186 = vector.broadcast %185 : vector<1x32xf32> to vector<8x32xf32>
    %187 = arith.mulf %183, %186 : vector<8x32xf32>
    %c0_88 = arith.constant 0 : index
    %c0_89 = arith.constant 0 : index
    %c0_90 = arith.constant 0 : index
    %188 = vector.load %arg18[%c0_88, %c0_89, %c0_90] : memref<1x1x32xf32, #tpu.memory_space<vmem>>, vector<1x1x32xf32>
    %189 = vector.shape_cast %188 : vector<1x1x32xf32> to vector<1x32xf32>
    %190 = vector.broadcast %189 : vector<1x32xf32> to vector<8x32xf32>
    %191 = arith.addf %187, %190 : vector<8x32xf32>
    %c0_91 = arith.constant 0 : index
    %c0_92 = arith.constant 0 : index
    %192 = vector.load %arg20[%c0_91, %c0_92] : memref<8x32xf32, #tpu.memory_space<vmem>>, vector<8x32xf32>
    tpu.vector_store %arg20[%c0_91, %c0_92], %191 {strides = array<i32>} : memref<8x32xf32, #tpu.memory_space<vmem>>, vector<8x32xf32>,
    %c1_i32 = arith.constant 1 : i32
    %193 = arith.cmpi eq, %arg1, %c1_i32 : i32
    %194 = arith.extui %193 : i1 to i32
    %c0_i32_93 = arith.constant 0 : i32
    %195 = arith.cmpi ne, %194, %c0_i32_93 : i32
    scf.if %195 {
      %196 = vector.shape_cast %191 : vector<8x32xf32> to vector<1x8x32xf32>
      %c0_94 = arith.constant 0 : index
      %c0_95 = arith.constant 0 : index
      %c0_96 = arith.constant 0 : index
      %197 = vector.load %arg19[%c0_94, %c0_95, %c0_96] : memref<1x8x32xf32, #tpu.memory_space<vmem>>, vector<1x8x32xf32>
      tpu.vector_store %arg19[%c0_94, %c0_95, %c0_96], %196 {strides = array<i32>} : memref<1x8x32xf32, #tpu.memory_space<vmem>>, vector<1x8x32xf32>,
    } else {
    }
    return
  }
  func.func @transform_0(%arg0: i32, %arg1: i32) -> (i32, i32, i32) {
    %c0_i32 = arith.constant 0 : i32
    %c0_i32_0 = arith.constant 0 : i32
    %c0_i32_1 = arith.constant 0 : i32
    return %arg0, %c0_i32, %c0_i32_0 : i32, i32, i32
  }
  func.func @transform_1(%arg0: i32, %arg1: i32) -> (i32, i32, i32) {
    %c0_i32 = arith.constant 0 : i32
    %c0_i32_0 = arith.constant 0 : i32
    %c0_i32_1 = arith.constant 0 : i32
    return %arg1, %c0_i32, %c0_i32_0 : i32, i32, i32
  }
  func.func @transform_2(%arg0: i32, %arg1: i32) -> (i32, i32, i32) {
    %c0_i32 = arith.constant 0 : i32
    %c0_i32_0 = arith.constant 0 : i32
    %c0_i32_1 = arith.constant 0 : i32
    return %arg1, %c0_i32, %c0_i32_0 : i32, i32, i32
  }
  func.func @transform_3(%arg0: i32, %arg1: i32) -> (i32, i32, i32) {
    %c0_i32 = arith.constant 0 : i32
    %c0_i32_0 = arith.constant 0 : i32
    %c0_i32_1 = arith.constant 0 : i32
    return %arg1, %c0_i32, %c0_i32_0 : i32, i32, i32
  }
  func.func @transform_4(%arg0: i32, %arg1: i32) -> (i32, i32, i32) {
    %c0_i32 = arith.constant 0 : i32
    %c0_i32_0 = arith.constant 0 : i32
    %c0_i32_1 = arith.constant 0 : i32
    return %arg1, %c0_i32, %c0_i32_0 : i32, i32, i32
  }
  func.func @transform_5(%arg0: i32, %arg1: i32) -> (i32, i32, i32) {
    %c0_i32 = arith.constant 0 : i32
    %c0_i32_0 = arith.constant 0 : i32
    %c0_i32_1 = arith.constant 0 : i32
    return %arg1, %c0_i32, %c0_i32_0 : i32, i32, i32
  }
  func.func @transform_6(%arg0: i32, %arg1: i32) -> (i32, i32, i32) {
    %c0_i32 = arith.constant 0 : i32
    %c0_i32_0 = arith.constant 0 : i32
    %c0_i32_1 = arith.constant 0 : i32
    return %arg1, %c0_i32, %c0_i32_0 : i32, i32, i32
  }
  func.func @transform_7(%arg0: i32, %arg1: i32) -> (i32, i32, i32) {
    %c0_i32 = arith.constant 0 : i32
    %c0_i32_0 = arith.constant 0 : i32
    %c0_i32_1 = arith.constant 0 : i32
    return %arg1, %c0_i32, %c0_i32_0 : i32, i32, i32
  }
  func.func @transform_8(%arg0: i32, %arg1: i32) -> (i32, i32, i32) {
    %c0_i32 = arith.constant 0 : i32
    %c0_i32_0 = arith.constant 0 : i32
    %c0_i32_1 = arith.constant 0 : i32
    return %arg1, %c0_i32, %c0_i32_0 : i32, i32, i32
  }
  func.func @transform_9(%arg0: i32, %arg1: i32) -> (i32, i32, i32) {
    %c0_i32 = arith.constant 0 : i32
    %c0_i32_0 = arith.constant 0 : i32
    %c0_i32_1 = arith.constant 0 : i32
    return %arg1, %c0_i32, %c0_i32_0 : i32, i32, i32
  }
  func.func @transform_10(%arg0: i32, %arg1: i32) -> (i32, i32, i32) {
    %c0_i32 = arith.constant 0 : i32
    %c0_i32_0 = arith.constant 0 : i32
    %c0_i32_1 = arith.constant 0 : i32
    return %arg1, %c0_i32, %c0_i32_0 : i32, i32, i32
  }
  func.func @transform_11(%arg0: i32, %arg1: i32) -> (i32, i32, i32) {
    %c0_i32 = arith.constant 0 : i32
    %c0_i32_0 = arith.constant 0 : i32
    %c0_i32_1 = arith.constant 0 : i32
    return %arg1, %c0_i32, %c0_i32_0 : i32, i32, i32
  }
  func.func @transform_12(%arg0: i32, %arg1: i32) -> (i32, i32, i32) {
    %c0_i32 = arith.constant 0 : i32
    %c0_i32_0 = arith.constant 0 : i32
    %c0_i32_1 = arith.constant 0 : i32
    return %arg1, %c0_i32, %c0_i32_0 : i32, i32, i32
  }
  func.func @transform_13(%arg0: i32, %arg1: i32) -> (i32, i32, i32) {
    %c0_i32 = arith.constant 0 : i32
    %c0_i32_0 = arith.constant 0 : i32
    %c0_i32_1 = arith.constant 0 : i32
    return %arg1, %c0_i32, %c0_i32_0 : i32, i32, i32
  }
  func.func @transform_14(%arg0: i32, %arg1: i32) -> (i32, i32, i32) {
    %c0_i32 = arith.constant 0 : i32
    %c0_i32_0 = arith.constant 0 : i32
    %c0_i32_1 = arith.constant 0 : i32
    return %arg1, %c0_i32, %c0_i32_0 : i32, i32, i32
  }
  func.func @transform_15(%arg0: i32, %arg1: i32) -> (i32, i32, i32) {
    %c0_i32 = arith.constant 0 : i32
    %c0_i32_0 = arith.constant 0 : i32
    %c0_i32_1 = arith.constant 0 : i32
    return %arg1, %c0_i32, %c0_i32_0 : i32, i32, i32
  }
  func.func @transform_16(%arg0: i32, %arg1: i32) -> (i32, i32, i32) {
    %c0_i32 = arith.constant 0 : i32
    %c0_i32_0 = arith.constant 0 : i32
    %c0_i32_1 = arith.constant 0 : i32
    return %arg1, %c0_i32, %c0_i32_0 : i32, i32, i32
  }
  func.func @transform_17(%arg0: i32, %arg1: i32) -> (i32, i32, i32) {
    %c0_i32 = arith.constant 0 : i32
    %c0_i32_0 = arith.constant 0 : i32
    %c0_i32_1 = arith.constant 0 : i32
    return %arg0, %c0_i32, %c0_i32_0 : i32, i32, i32
  }
}

</mosaic_0001>

<bundles_post_ra>
// kernel: tpu_custom_call.1
= control target key start
LH: loop header
LB: loop body
LE: loop exit
PB: predicated region body
PF: predicated region fallthrough
CT: control target
= control target key end

     0   :  { %s3888_s0 = inlined_call_operand.hbm [shape: f32[2,8,32], index: 0, kind: input, shape index: {}]   ;;  %s3889_s1 = inlined_call_operand.vmem [shape: f32[2,32,32], index: 1, kind: input, shape index: {}]   ;;  %s3890_s2 = inlined_call_operand.vmem [shape: f32[2,1,32], index: 2, kind: input, shape index: {}]   ;;  %s3891_s3 = inlined_call_operand.vmem [shape: f32[2,32,32], index: 3, kind: input, shape index: {}]   ;;  %s3892_s4 = inlined_call_operand.vmem [shape: f32[2,1,32], index: 4, kind: input, shape index: {}]   ;;  %s3893_s5 = inlined_call_operand.vmem [shape: f32[2,32,32], index: 5, kind: input, shape index: {}]   ;;  %s3894_s6 = inlined_call_operand.vmem [shape: f32[2,1,32], index: 6, kind: input, shape index: {}]   ;;  %s3895_s7 = inlined_call_operand.hbm [shape: f32[2,32,32], index: 7, kind: input, shape index: {}]   ;;  %s3896_s8 = inlined_call_operand.vmem [shape: f32[2,1,32], index: 8, kind: input, shape index: {}]   ;;  %s3897_s9 = inlined_call_operand.vmem [shape: f32[2,1,32], index: 9, kind: input, shape index: {}]   ;;  %s3898_s10 = inlined_call_operand.vmem [shape: f32[2,1,32], index: 10, kind: input, shape index: {}]   ;;  %s3899_s11 = inlined_call_operand.hbm [shape: f32[2,32,64], index: 11, kind: input, shape index: {}]   ;;  %s3900_s12 = inlined_call_operand.vmem [shape: f32[2,1,64], index: 12, kind: input, shape index: {}]   ;;  %s3901_s13 = inlined_call_operand.vmem [shape: f32[2,64,32], index: 13, kind: input, shape index: {}]   ;;  %s3902_s14 = inlined_call_operand.vmem [shape: f32[2,1,32], index: 14, kind: input, shape index: {}]   ;;  %s3903_s15 = inlined_call_operand.vmem [shape: f32[2,1,32], index: 15, kind: input, shape index: {}]   ;;  %s3904_s16 = inlined_call_operand.vmem [shape: f32[2,1,32], index: 16, kind: input, shape index: {}]   ;;  %s3905_s17 = inlined_call_operand.hbm [shape: f32[2,8,32], index: 17, kind: output, shape index: {}]  }
   0x1   :  { %3928 = sst [smem:[#allocation29_spill]] %s3888_s0 }
   0x2   :  { %3929 = sst [smem:[#allocation30_spill]] %s3889_s1 }
   0x3   :  { %3930 = sst [smem:[#allocation31_spill]] %s3891_s3 }
   0x4   :  { %3931 = sst [smem:[#allocation32_spill]] %s3892_s4 }
   0x5   :  { %3932 = sst [smem:[#allocation33_spill]] %s3893_s5 }
   0x6   :  { %3933 = sst [smem:[#allocation34_spill]] %s3894_s6 }
   0x7   :  { %3934 = sst [smem:[#allocation35_spill]] %s3895_s7 }
   0x8   :  { %3935 = sst [smem:[#allocation36_spill]] %s3896_s8 }
   0x9   :  { %3936 = sst [smem:[#allocation37_spill]] %s3897_s9 }
   0xa   :  { %3937 = sst [smem:[#allocation38_spill]] %s3898_s10 }
   0xb   :  { %3938 = sst [smem:[#allocation39_spill]] %s3899_s11 }
   0xc   :  { %3939 = sst [smem:[#allocation40_spill]] %s3900_s12 }
   0xd   :  { %3940 = sst [smem:[#allocation41_spill]] %s3901_s13 }
   0xe   :  { %3941 = sst [smem:[#allocation42_spill]] %s3902_s14 }
   0xf   :  { %3942 = sst [smem:[#allocation43_spill]] %s3903_s15 }
  0x10   :  { %3943 = sst [smem:[#allocation44_spill]] %s3904_s16 }
  0x11   :  { %3944 = sst [smem:[#allocation45_spill]] %s3905_s17 }
  0x12   :  { %22 = vsyncpa [#allocation4], 0 }
  0x13   :  { %24 = vsyncpa [#allocation4 + $0x1], 0 }
  0x14   :  { %25 = vsyncpa [#allocation7], 0 }
  0x15   :  { %27 = vsyncpa [#allocation7 + $0x1], 0 }
  0x16   :  { %28 = vsyncpa [#allocation5], 0 }
  0x17   :  { %30 = vsyncpa [#allocation5 + $0x1], 0  ;;  %s3315_s24 = smov 0   ;;  %s3317_s25 = smov 0  }
  0x18   :  { %s3319_s26 = smov 0   ;;  %s3321_s27 = smov 0  }
  0x19   :  { %s3323_s28 = smov 0   ;;  %s3325_s29 = smov 0  }
  0x1a   :  { %s3327_s0 = smov 0   ;;  %s3329_s30 = smov 0  }
  0x1b   :  { %s3331_s18 = smov 0   ;;  %s3333_s19 = smov 0  }
  0x1c   :  { %s3335_s1 = smov 0  }
  0x1d LB: > { %3945 = sst [smem:[#allocation13_spill]] %s3176_s25  ;;  %s45_s20 = sadd.s32 1, %s3204_s18  ;;  %s3212_s1 = sphi %s3335_s1, %s36_s1   ;;  %s3208_s19 = sphi %s3333_s19, %s4023_s19   ;;  %s3204_s18 = sphi %s3331_s18, %s4022_s18   ;;  %s3200_s30 = sphi %s3329_s30, %s4021_s30   ;;  %s3196_s0 = sphi %s3327_s0, %s4020_s0   ;;  %s3192_s29 = sphi %s3325_s29, %s4019_s29   ;;  %s3188_s28 = sphi %s3323_s28, %s4018_s28   ;;  %s3184_s27 = sphi %s3321_s27, %s4017_s27   ;;  %s3180_s26 = sphi %s3319_s26, %s4016_s26   ;;  %s3176_s25 = sphi %s3317_s25, %s4015_s25   ;;  %s3172_s24 = sphi %s3315_s24, %s4014_s24  }
  0x1e   : > { %3946 = sst [smem:[#allocation14_spill]] %s3180_s26  ;;  %p63_p0 = scmp.eq.s32.totalorder %s3212_s1, 0 }
  0x1f   : > { %3947 = sst [smem:[#allocation15_spill]] %s3184_s27  ;;  %p3372_p1 = scmp.ge.s32.totalorder %s45_s20, 2 }
  0x20   : > { %3948 = sst [smem:[#allocation16_spill]] %s3188_s28  ;;  %s237_s22 = sadd.s32 1, %s3180_s26 }
  0x21   : > { %3949 = sst [smem:[#allocation17_spill]] %s3192_s29  ;;  %p244_p2 = scmp.ne.s32.totalorder %s3180_s26, %s3176_s25 }
  0x22   : > { %3950 = sst [smem:[#allocation18_spill]] %s3200_s30  ;;  %s4025_s20 = smov (%p3372_p1, %s45_s20), 0 }
  0x23   : > { %3951 = sst [smem:[#allocation19_spill]] %s3204_s18  ;;  %p246_p3 = por %p244_p2, %p63_p0 }
  0x24   : > { %3952 = sst [smem:[#allocation20_spill]] %s3208_s19  ;;  %s234_s23 = ssub.s32 %s3204_s18, %s4025_s20 }
  0x25   : > { %3953 = sst [smem:[#allocation21_spill]] %s3212_s1  ;;  %p3909_p4 = scmp.lt.s32.totalorder %s3212_s1, 4 }
  0x26   : > { %3955 = sst [smem:[#allocation22_spill]] %s4025_s20  ;;  %p235_p5 = scmp.eq.s32.totalorder %s234_s23, 0 }
  0x27   : > { %s594_s17 = sand.u32 1, %s3212_s1   ;;  %s596_s30 = sand.u32 1, %s3180_s26  }
  0x28   : > { %s3391_s16 = scalar_select %p235_p5, %s3180_s26, %s237_s22  }
  0x29   : > { %s3393_s15 = sshll.u32 %s596_s30, 5  ;;  %s2683_s14 = sshll.u32 %s3204_s18, 9 }
  0x2a   : > { %3956 = sst [smem:[#allocation23_spill]] %s3391_s16  ;;  %s598_s9 = scalar_lea.vmem [#allocation6], %s3393_s15 }
  0x2b   : > { %s3957_s7 = sld [smem:[#allocation35_spill]]  ;;  %s605_s8 = sshll.u32 %s598_s9, 4  ;;  %s606_s8 = int_to_ptr.vmem [resolvable:$true] %s605_s8 }
  0x2c   : > { %p3402_p6 = pnand %p3909_p4, %p246_p3  ;;  %s3406_s22 = scalar_lea.sflag [#allocation7], %s594_s17 }
  0x2d   : > { %s3017_s30 = scalar_lea.vmem %s606_s8, 512  ;;  %s3214_s12 = smov [#allocation6]  }
  0x2e   : > { %p3908_p7 = pneg %p3402_p6  ;;  %p3018_p8 = scmp.ne.s32.totalorder %s606_s8, %s3017_s30 }
  0x2f   : > { %s3022_s9 = sshll.u32 %s3214_s12, 4  ;;  %s3023_s9 = int_to_ptr.vmem [resolvable:$false] %s3022_s9 }
  0x30   : > { %p3020_p9 = pnand %p3018_p8, %p3908_p7  ;;  %s3024_s13 = scalar_lea.vmem %s3023_s9, 1024 }
  0x31   : > { %s604_s10 = scalar_lea.hbm %s3957_s7, %s2683_s14  ;;  %p3025_p11 = scmp.lt.s32.totalorder %s606_s8, %s3023_s9 }
  0x32   : > { %p3021_p10 = pneg %p3020_p9  ;;  %p3026_p12 = scmp.lt.s32.totalorder %s3024_s13, %s3017_s30 }
  0x34   : > { %p3027_p13 = por %p3026_p12, %p3025_p11 }
  0x36   : > { %p3028_p2 = pnand %p3027_p13, %p3021_p10 }
  0x38   : > { %3031 = shalt.err (!%p3028_p2)
}
  0x39   : > { %s3910_s23 = smov 128   ;;  %s3911_s17 = smov 8  }
  0x3a   : > { %2879 = dma.hbm_to_vmem [thread:$0]  (!%p3402_p6), %s604_s10, 512, %s606_s8, %s3406_s22, %s3910_s23, %s3910_s23, %s3911_s17  }
  0x3b   : > { %p250_p3 = scmp.ne.s32.totalorder %s3176_s25, %s3172_s24  ;;  %s3959_s11 = sld [smem:[#allocation39_spill]] }
  0x3c   : > { %p2633_p5 = scmp.ge.s32.totalorder %s3212_s1, 1  ;;  %s637_s13 = scalar_lea.vmem [#allocation8], %s3393_s15 }
  0x3d   : > { %s644_s7 = sshll.u32 %s637_s13, 4  ;;  %p684_p8 = scmp.lt.s32.totalorder %s3212_s1, 5  ;;  %s3499_s7 = int_to_ptr.vmem [resolvable:$true] %s644_s7 }
  0x3e   : > { %s3434_s8 = sadd.s32 4294967295, %s3212_s1   ;;  %s2622_s10 = sadd.s32 4294967294, %s3212_s1  }
  0x3f   : > { %p3429_p9 = pnand %p2633_p5, %p684_p8  ;;  %s55_s15 = sadd.s32 1, %s3192_s29 }
  0x40   : > { %p62_p10 = scmp.ne.s32.totalorder %s3192_s29, %s3188_s28  ;;  %p68_p12 = scmp.ne.s32.totalorder %s3188_s28, %s3184_s27 }
  0x41   : > { %s3424_s9 = scalar_lea.hbm %s3959_s11, %s2683_s14  ;;  %s48_s14 = sadd.s32 1, %s3208_s19 }
  0x42   : > { %s4027_s14 = smov (!%p3372_p1, %s48_s14), %s3208_s19  ;;  %p3448_p13 = por %p63_p0, %p62_p10 }
  0x43   : > { %p50_p11 = scmp.ge.s32.totalorder %s4027_s14, 2  ;;  %p69_p2 = scmp.eq.s32.totalorder %s3434_s8, 0 }
  0x44   : > { %p508_p0 = scmp.eq.s32.totalorder %s3434_s8, 3  ;;  %p514_p7 = scmp.eq.s32.totalorder %s2622_s10, 3 }
  0x45   : > { %s4029_s14 = smov (%p50_p11, %s4027_s14), 0  ;;  %p3458_p1 = por %p69_p2, %p68_p12 }
  0x46   : > { %3962 = sst [smem:[#allocation24_spill]] %s4029_s14  ;;  %p3465_p5 = por %p250_p3, %p69_p2 }
  0x47   : > { %s52_s13 = ssub.s32 %s3208_s19, %s4029_s14  ;;  %p3472_p4 = por %p508_p0, %p62_p10 }
  0x48   : > { %p53_p8 = scmp.eq.s32.totalorder %s52_s13, 0  ;;  %s534_s17 = sand.u32 1, %s3192_s29  }
  0x49   : > { %s3965_s23 = scalar_select %p3472_p4, 1, 0 }
  0x4a   : > { %s3478_s11 = scalar_select %p53_p8, %s3192_s29, %s55_s15  }
  0x4b   : > { %3966 = sst [smem:[#allocation25_spill]] %s3965_s23  ;;  %p3483_p11 = por %p514_p7, %p68_p12 }
  0x4c   : > { %3967 = sst [smem:[#allocation26_spill]] %s3478_s11  ;;  %s2625_s24 = sshll.u32 %s534_s17, 3 }
  0x4d   : > { %s3968_s18 = scalar_select %p3483_p11, 1, 0 }
  0x4e   : > { %s2626_s16 = sshll.u32 %s3208_s19, 7  ;;  %s3970_s14 = sld [smem:[#allocation29_spill]] }
  0x4f   : > { %3969 = sst [smem:[#allocation27_spill]] %s3968_s18  ;;  %s538_s13 = scalar_lea.vmem [#allocation3], %s2625_s24 }
  0x50   : > { %s545_s10 = sshll.u32 %s538_s13, 4  ;;  %p3971_p3 = scmp.lt.s32.totalorder %s3212_s1, 4  ;;  %s546_s10 = int_to_ptr.vmem [resolvable:$true] %s545_s10 }
  0x51   : > { %s535_s15 = scalar_lea.sflag [#allocation4], %s534_s17  ;;  %s3045_s19 = scalar_lea.vmem %s546_s10, 128 }
  0x52   : > { %p3495_p10 = pnand %p3971_p3, %p3448_p13  ;;  %p3046_p12 = scmp.ne.s32.totalorder %s546_s10, %s3045_s19 }
  0x53   : > { %s3217_s5 = smov [#allocation3]  }
  0x54   : > { %s543_s4 = scalar_lea.hbm %s3970_s14, %s2626_s16  ;;  %p3034_p7 = pneg %p3495_p10 }
  0x55   : > { %s3050_s16 = sshll.u32 %s3217_s5, 4  ;;  %s3051_s16 = int_to_ptr.vmem [resolvable:$false] %s3050_s16 }
  0x56   : > { %p3048_p2 = pnand %p3046_p12, %p3034_p7  ;;  %s3052_s26 = scalar_lea.vmem %s3051_s16, 256 }
  0x57   : > { %p3053_p8 = scmp.lt.s32.totalorder %s546_s10, %s3051_s16  ;;  %p3054_p13 = scmp.lt.s32.totalorder %s3052_s26, %s3045_s19 }
  0x58   : > { %p3049_p0 = pneg %p3048_p2 }
  0x59   : > { %p3055_p3 = por %p3054_p13, %p3053_p8 }
  0x5b   : > { %p3056_p11 = pnand %p3055_p3, %p3049_p0 }
  0x5d   : > { %3059 = shalt.err (!%p3056_p11)
}
  0x5e   : > { %2876 = dma.hbm_to_vmem [thread:$0]  (!%p3495_p10), %s543_s4, 128, %s546_s10, %s535_s15  }
  0x5f   : > { %s3073_s17 = scalar_lea.vmem %s3499_s7, 512  ;;  %p3973_p7 = pneg %p3402_p6 }
  0x60   : > { %p3074_p4 = scmp.ne.s32.totalorder %s3499_s7, %s3073_s17  ;;  %s3218_s14 = smov [#allocation8]  }
  0x61   : > { %s3078_s30 = sshll.u32 %s3218_s14, 4  ;;  %s3079_s30 = int_to_ptr.vmem [resolvable:$false] %s3078_s30 }
  0x62   : > { %p3076_p12 = pnand %p3074_p4, %p3973_p7  ;;  %s3080_s19 = scalar_lea.vmem %s3079_s30, 1024 }
  0x63   : > { %p3081_p8 = scmp.lt.s32.totalorder %s3499_s7, %s3079_s30  ;;  %p3082_p0 = scmp.lt.s32.totalorder %s3080_s19, %s3073_s17 }
  0x64   : > { %p3077_p2 = pneg %p3076_p12 }
  0x65   : > { %p3083_p11 = por %p3082_p0, %p3081_p8 }
  0x67   : > { %p3084_p13 = pnand %p3083_p11, %p3077_p2 }
  0x69   : > { %3087 = shalt.err (!%p3084_p13)
}
  0x6a   : > { %s3974_s23 = smov 8   ;;  %s3975_s24 = smov 128  }
  0x6b   : > { %2882 = dma.hbm_to_vmem [thread:$0]  (!%p3402_p6), %s3424_s9, 512, %s3499_s7, %s3406_s22, %s3975_s24, %s3975_s24, %s3974_s23  }
  0x6c   : > { %688 = sbr.rel (%p3429_p9) target bundleno = 3629 (0xe2d), region = 88 }
  0x71   : > { %s3522_s4 = sand.u32 1, %s3188_s28  }
  0x72   : > { %s3919_s13 = sshll.u32 %s3522_s4, 3  ;;  %s691_s10 = scalar_lea.sflag [#allocation4], %s3522_s4 }
  0x73   : > { %s3528_s6 = scalar_lea.vmem [#allocation3], %s3919_s13 }
  0x74   : > { %3159 = dma.done.wait (%p3458_p1), %s691_s10, 128  }
  0x75   : > { %3161 = vsyncadd (%p3458_p1), %s691_s10, 4294967168  ;;  %s699_s7 = sand.u32 1, %s3434_s8   ;;  %s701_s20 = sand.u32 1, %s3176_s25  }
  0x76   : > { %s2635_s22 = sshll.u32 %s701_s20, 5  ;;  %s700_s9 = scalar_lea.sflag [#allocation7], %s699_s7 }
  0x77   : > { %s3536_s15 = scalar_lea.vmem [#allocation6], %s2635_s22 }
  0x78   : > { %3976 = sst [smem:[#allocation28_spill]] %s3536_s15 }
  0x79   : > { %3163 = dma.done.wait (%p3465_p5), %s700_s9, 1024  }
  0x7a   : > { %3165 = vsyncadd (%p3465_p5), %s700_s9, 4294966272  ;;  %p823_p4 = scmp.lt.s32.totalorder %s3196_s0, 1  ;;  %s3977_s14 = sld [smem:[#allocation30_spill]] }
  0x7b   : > { %s3978_s3 = sld [smem:[#allocation31_spill]]  ;;  %s3608_s9 = scalar_lea.vmem [#allocation8], %s2635_s22 }
  0x7c   : > { %s3544_s5 = scalar_select %p823_p4, %s3196_s0, 1 }
  0x7d   : > { %s3980_s29 = sld [smem:[#allocation33_spill]]  ;;  %s3990_s11 = sshll.u32 %s3522_s4, 3 }
  0x7e   : > { %s2685_s8 = sshll.u32 %s3544_s5, 5  ;;  %s3981_s26 = sld [smem:[#allocation34_spill]] }
  0x7f   : > { %s3986_s12 = sld [smem:[#allocation41_spill]]  ;;  %p2646_p6 = scmp.ne.s32.totalorder %s3196_s0, 0 }
  0x80   : > { %s3554_s30 = scalar_lea.vmem %s3977_s14, %s2685_s8  ;;  %s3987_s14 = sld [smem:[#allocation42_spill]] }
  0x81   : > { %s3559_s24 = scalar_lea.vmem %s3978_s3, %s2685_s8  ;;  %s3988_s23 = sld [smem:[#allocation43_spill]] }
  0x82   : > { %s3989_s7 = sld [smem:[#allocation44_spill]] }
  0x83   : > { %s3568_s21 = scalar_lea.vmem %s3980_s29, %s2685_s8  ;;  %s3985_s29 = sld [smem:[#allocation40_spill]] }
  0x84   : > { %s846_s17 = scalar_lea.vmem %s3981_s26, %s3544_s5  ;;  %s2688_s8 = sshll.u32 %s3544_s5, 6 }
  0x85   : > { %s3594_s26 = scalar_lea.vmem %s3986_s12, %s2688_s8  ;;  %876 = sbr.rel (%p2646_p6) target bundleno = 140 (0x8c), region = 104 }
  0x86   : > { %s866_s18 = scalar_lea.vmem %s3987_s14, %s3544_s5 }
  0x87   : > { %s869_s27 = scalar_lea.vmem %s3988_s23, %s3544_s5 }
  0x88   : > { %s872_s20 = scalar_lea.vmem %s3989_s7, %s3544_s5 }
  0x89   : > { %s858_s13 = scalar_lea.vmem %s3985_s29, %s3544_s5  ;;  %s3612_s29 = scalar_lea.vmem [#allocation9], %s3990_s11 }
  0x8a   : > { %v877_v0 = vld [vmem:[%s3528_s6] sm:$0xff]  ;;  %vm878_vm0 = vcmask 261120  }
  0x8b   : > { %879 = vst.msk [vmem:[#allocation2] sm:$0xff] %vm878_vm0, %v877_v0 }
  0x8c PF: > { %v884_v1 = vld [vmem:[%s3554_s30 + $0x18] sm:$0xff]  ;;  %v3219_v3 = vmov 0.0   ;;  %v883_v4 = vld [vmem:[%s3554_s30 + $0x10] sm:$0xff]  ;;  %v882_v6 = vld [vmem:[%s3554_s30 + $0x8] sm:$0xff]  ;;  %vm904_vm1 = vcmask 261120   ;;  %vm3220_vm2 = vmmov 0   ;;  %s3991_s15 = scalar_lea.vmem %s3890_s2, %s3544_s5 }
  0x8d   : > { %v888_v2 = vld [vmem:[%s3559_s24 + $0x18] sm:$0xff]  ;;  %2742 = vmatprep.subr.mxu0 %v3219_v3  ;;  %2753 = vmatprep.subr.mxu1 %v3219_v3  ;;  %v887_v5 = vld [vmem:[%s3559_s24 + $0x10] sm:$0xff]  ;;  %v886_v7 = vld [vmem:[%s3559_s24 + $0x8] sm:$0xff]  ;;  %s3992_s8 = sld [smem:[#allocation32_spill]]  ;;  %vm1133_vm3 = vcmask 64512   ;;  %s3222_s14 = smov 112  }
  0x8e   : > { %2743 = vmatpush3.msra.mxu0 %v884_v1  ;;  %2754 = vmatpush3.msra.mxu1 %v888_v2  ;;  %v881_v8 = vld [vmem:[%s3554_s30] sm:$0xff]  ;;  %v892_v11 = vld [vmem:[%s3568_s21 + $0x18] sm:$0xff]  ;;  %v891_v12 = vld [vmem:[%s3568_s21 + $0x10] sm:$0xff]  ;;  %s3223_s19 = smov 104   ;;  %s3996_s1 = sld [smem:[#allocation36_spill]]  ;;  %vm2235_vm4 = vcmask 523264  }
  0x8f   : > { %2744 = vmatprep.subr.mxu0 %v3219_v3  ;;  %2755 = vmatprep.subr.mxu1 %v3219_v3  ;;  %v885_v9 = vld [vmem:[%s3559_s24] sm:$0xff]  ;;  %v890_v13 = vld [vmem:[%s3568_s21 + $0x8] sm:$0xff]  ;;  %s3998_s11 = sld [smem:[#allocation37_spill]]  ;;  %p2678_p9 = scmp.ne.s32.totalorder %s3196_s0, 1 }
  0x90   : > { %2745 = vmatpush3.msra.mxu0 %v883_v4  ;;  %2756 = vmatpush3.msra.mxu1 %v887_v5  ;;  %v889_v14 = vld [vmem:[%s3568_s21] sm:$0xff]  ;;  %s3221_s21 = smov 120   ;;  %s4000_s30 = sld [smem:[#allocation38_spill]] }
  0x91   : > { %2746 = vmatprep.subr.mxu0 %v3219_v3  ;;  %2757 = vmatprep.subr.mxu1 %v3219_v3  ;;  %v2647_v15 = vld [vmem:[%s3991_s15] ss:$0 sm:$0xff] }
  0x92   : > { %2747 = vmatpush3.msra.mxu0 %v882_v6  ;;  %2758 = vmatpush3.msra.mxu1 %v886_v7  ;;  %v3632_v10 = vld [vmem:[#allocation2] sm:$0xff] }
  0x93   : > { %2748 = vmatprep.subr.mxu0 %v3219_v3  ;;  %2759 = vmatprep.subr.mxu1 %v3219_v3  ;;  %s3993_s16 = scalar_lea.vmem %s3992_s8, %s3544_s5  ;;  %v2651_v24 = vld [vmem:[%s846_s17] ss:$0 sm:$0xff]  ;;  %s3995_s17 = sld [smem:[#allocation28_spill]] }
  0x94   : > { %2749 = vmatpush3.msra.mxu0 %v881_v8  ;;  %2750 = vmatprep.mubr.msk.f32.mxu0 %vm3220_vm2, %v3219_v3  ;;  %v2649_v16 = vld [vmem:[%s3993_s16] ss:$0 sm:$0xff]  ;;  %s3997_s10 = scalar_lea.vmem %s3996_s1, %s3544_s5 }
  0x95   : > { %2760 = vmatpush3.msra.mxu1 %v885_v9  ;;  %2761 = vmatprep.mubr.msk.f32.mxu1 %vm3220_vm2, %v3219_v3  ;;  %s3999_s6 = scalar_lea.vmem %s3998_s11, %s3544_s5 }
  0x96   : > { %2751 = vmatmul.mubr.msk.f32.vlgmr.msra.gmra.mxu0 %vm904_vm1, %v3632_v10  ;;  %2762 = vmatmul.mubr.msk.f32.vlgmr.msra.gmra.mxu1 %vm904_vm1, %v3632_v10  ;;  %s4001_s24 = scalar_lea.vmem %s4000_s30, %s3544_s5 }
  0x97   : > { %2764 = vmatprep.subr.mxu0 %v3219_v3  ;;  %2772 = vmatprep.mubr.msk.f32.mxu0 %vm3220_vm2, %v3219_v3 }
  0x98   : > { %2765 = vmatpush3.msra.mxu0 %v892_v11  ;;  %2780 = vmatprep.subr.mxu1 %v3219_v3 }
  0x99   : > { %2766 = vmatprep.subr.mxu0 %v3219_v3  ;;  %2782 = vmatprep.mubr.msk.f32.mxu1 %vm3220_vm2, %v3219_v3  ;;  %v894_v52 = vld [vmem:[%s3995_s17 + $0x8] sm:$0xff]  ;;  %v893_v60 = vld [vmem:[%s3995_s17] sm:$0xff] }
  0x9a   : > { %2767 = vmatpush3.msra.mxu0 %v891_v12 }
  0x9b   : > { %2768 = vmatprep.subr.mxu0 %v3219_v3 }
  0x9c   : > { %2769 = vmatpush3.msra.mxu0 %v890_v13 }
  0x9d   : > { %2770 = vmatprep.subr.mxu0 %v3219_v3 }
  0x9e   : > { %2771 = vmatpush3.msra.mxu0 %v889_v14 }
  0x9f   : > { %2773 = vmatmul.mubr.msk.f32.vlgmr.msra.gmra.mxu0 %vm904_vm1, %v3632_v10  ;;  %2775 = vmatprep.subr.mxu0 %v3219_v3 }
  0xa0   : > { %2777 = vmatprep.mubr.msk.f32.mxu0 %vm3220_vm2, %v3219_v3 }
 0x156   : > { %v974_v17 = vpop.f32.mrf.mxu0  ;;  %v1051_v18 = vpop.f32.mrf.mxu1 }
 0x157   : > { %v975_v19 = vadd.f32 %v2647_v15, %v974_v17  ;;  %v3670_v20 = vadd.f32 %v2649_v16, %v1051_v18 }
 0x158   : > { %v2752_v21 = vpop.f32.mrf.mxu0  ;;  %v2763_v22 = vpop.f32.mrf.mxu1 }
 0x159   : > { %v3672_v23 = vmul.f32 0.35355338, %v975_v19  ;;  %1299 = vrot.lane.b32.xlu0 %v3670_v20, %s3221_s21  ;;  %2776 = vmatpush3.xpose.msk.msra.mxu0 %vm1133_vm3, %v3670_v20 }
 0x15a   : > { %2785 = vmatprep.subr.mxu0 %v3219_v3 }
 0x15c   : > { %2778 = vmatmul.mubr.msk.f32.vlgmr.msra.gmra.mxu0 %vm1133_vm3, %v3672_v23 }
 0x15d   : > { %1297 = vrot.lane.b32.xlu0 %v3672_v23, %s3221_s21  ;;  %2787 = vmatprep.mubr.msk.f32.mxu0 %vm3220_vm2, %v3219_v3 }
 0x15f   : > { %v1128_v25 = vpop.f32.mrf.mxu0 }
 0x160   : > { %v3690_v26 = vadd.f32 %v2651_v24, %v1128_v25 }
 0x161   : > { %v2774_v27 = vpop.f32.mrf.mxu0 }
 0x162   : > { %2781 = vmatpush3.msra.mxu1 %v3690_v26 }
 0x163   : > { %2790 = vmatprep.subr.mxu1 %v3219_v3 }
 0x1cb   : > { %v1300_v28 = vpop.permute.xlu0 %1299 }
 0x1cc   : > { %2786 = vmatpush3.xpose.msk.msra.mxu0 %vm1133_vm3, %v1300_v28 }
 0x1cd   : > { %2795 = vmatprep.subr.mxu0 %v3219_v3 }
 0x1cf   : > { %v1298_v29 = vpop.permute.xlu0 %1297 }
 0x1d0   : > { %2788 = vmatmul.mubr.msk.f32.vlgmr.msra.gmra.mxu0 %vm1133_vm3, %v1298_v29 }
 0x1d1   : > { %2797 = vmatprep.mubr.msk.f32.mxu0 %vm3220_vm2, %v3219_v3  ;;  %2796 = vmatpush3.msra.mxu0 %v894_v52  ;;  %v2669_v52 = vld [vmem:[%s3997_s10] ss:$0 sm:$0xff] }
 0x1d2   : > { %2805 = vmatprep.subr.mxu0 %v3219_v3 }
 0x21c   : > { %v1206_v30 = vpop.f32.mrf.mxu0 }
 0x21d   : > { %v1210_v31 = vsel %vm1133_vm3, %v1206_v30, -inf }
 0x21e   : > { %1211 = vmax.xlane.f32.xlu1 %v1210_v31  ;;  %v2779_v32 = vpop.f32.mrf.mxu0 }
 0x290   : > { %v1371_v33 = vpop.f32.mrf.mxu0 }
 0x291   : > { %v1375_v34 = vsel %vm1133_vm3, %v1371_v33, -inf }
 0x292   : > { %1376 = vmax.xlane.f32.xlu1 %v1375_v34  ;;  %v2789_v35 = vpop.f32.mrf.mxu0 }
 0x2a7   : > { %v1212_v36 = vpop.xlane.xlu1 %1211 }
 0x2a8   : > { %v1213_v37 = vsub.f32 %v1206_v30, %v1212_v36 }
 0x2aa   : > { %v1214_v38 = vmul.f32 1.442695, %v1213_v37 }
 0x2ac   : > { %2984 = vpow2.f32 %v1214_v38 }
 0x2b9   : > { %v2985_v39 = vpop.eup %2984 }
 0x2ba   : > { %v1216_v40 = vsel %vm1133_vm3, %v2985_v39, 0.0 }
 0x2bb   : > { %1217 = vadd.xlane.f32.xlu0 %v1216_v40 }
 0x31b   : > { %v1377_v41 = vpop.xlane.xlu1 %1376 }
 0x31c   : > { %v1378_v42 = vsub.f32 %v1371_v33, %v1377_v41 }
 0x31e   : > { %v1379_v43 = vmul.f32 1.442695, %v1378_v42  ;;  %v896_v42 = vld [vmem:[%s3995_s17 + $0x18] sm:$0xff] }
 0x320   : > { %2986 = vpow2.f32 %v1379_v43 }
 0x32d   : > { %v2987_v44 = vpop.eup %2986 }
 0x32e   : > { %v1381_v45 = vsel %vm1133_vm3, %v2987_v44, 0.0 }
 0x32f   : > { %1382 = vadd.xlane.f32.xlu1 %v1381_v45 }
 0x340   : > { %1390 = vrot.lane.b32.xlu1 %v3690_v26, %s3221_s21 }
 0x344   : > { %v1218_v46 = vpop.xlane.xlu0 %1217  ;;  %1614 = vrot.lane.b32.xlu1 %v3670_v20, %s3222_s14 }
 0x345   : > { %2988 = vrcp.f32 %v1218_v46 }
 0x348   : > { %1612 = vrot.lane.b32.xlu1 %v3672_v23, %s3222_s14 }
 0x352   : > { %v2989_v47 = vpop.eup %2988 }
 0x353   : > { %v1220_v48 = vmul.f32 %v2989_v47, %v1218_v46 }
 0x355   : > { %v1221_v49 = vsub.f32 2.0, %v1220_v48 }
 0x357   : > { %v1222_v50 = vmul.f32 %v2989_v47, %v1221_v49 }
 0x359   : > { %v1223_v51 = vmul.f32 %v2985_v39, %v1222_v50 }
 0x35b   : > { %2783 = vmatmul.mubr.msk.f32.vlgmr.msra.gmra.mxu1 %vm1133_vm3, %v1223_v51 }
 0x35c   : > { %2792 = vmatprep.mubr.msk.f32.mxu1 %vm3220_vm2, %v3219_v3 }
 0x3b8   : > { %v1383_v53 = vpop.xlane.xlu1 %1382 }
 0x3b9   : > { %2990 = vrcp.f32 %v1383_v53 }
 0x3bc   : > { %v1391_v54 = vpop.permute.xlu1 %1390 }
 0x3bd   : > { %2791 = vmatpush3.msra.mxu1 %v1391_v54 }
 0x3be   : > { %2800 = vmatprep.subr.mxu1 %v3219_v3 }
 0x3c0   : > { %v1615_v63 = vpop.permute.xlu1 %1614 }
 0x3c4   : > { %v1613_v2 = vpop.permute.xlu1 %1612 }
 0x3c6   : > { %v2991_v55 = vpop.eup %2990 }
 0x3c7   : > { %v1385_v56 = vmul.f32 %v2991_v55, %v1383_v53 }
 0x3c9   : > { %v1386_v57 = vsub.f32 2.0, %v1385_v56 }
 0x3cb   : > { %v1387_v58 = vmul.f32 %v2991_v55, %v1386_v57 }
 0x3cd   : > { %v1388_v59 = vmul.f32 %v2987_v44, %v1387_v58 }
 0x3cf   : > { %2793 = vmatmul.mubr.msk.f32.vlgmr.msra.gmra.mxu1 %vm1133_vm3, %v1388_v59 }
 0x3d0   : > { %2801 = vmatpush3.msra.mxu1 %v893_v60  ;;  %2802 = vmatprep.mubr.msk.f32.mxu1 %vm3220_vm2, %v3219_v3 }
 0x3d1   : > { %2810 = vmatprep.subr.mxu1 %v3219_v3 }
 0x41b   : > { %v1293_v61 = vpop.f32.mrf.mxu1 }
 0x41c   : > { %2803 = vmatmul.mubr.msk.f32.vlgmr.msra.gmra.mxu1 %vm1133_vm3, %v1293_v61 }
 0x41d   : > { %v2784_v62 = vpop.f32.mrf.mxu1  ;;  %2812 = vmatprep.mubr.msk.f32.mxu1 %vm3220_vm2, %v3219_v3 }
 0x48f   : > { %v1462_v0 = vpop.f32.mrf.mxu1 }
 0x490   : > { %2798 = vmatmul.mubr.msk.f32.vlgmr.msra.gmra.mxu0 %vm1133_vm3, %v1462_v0  ;;  %v2137_v0 = vld [vmem:[%s3608_s9 + $0x10] sm:$0xff] }
 0x491   : > { %2806 = vmatpush3.xpose.msk.msra.mxu0 %vm1133_vm3, %v1615_v63  ;;  %v2794_v1 = vpop.f32.mrf.mxu1  ;;  %2807 = vmatprep.mubr.msk.f32.mxu0 %vm3220_vm2, %v3219_v3  ;;  %v2138_v63 = vld [vmem:[%s3608_s9 + $0x18] sm:$0xff] }
 0x492   : > { %2815 = vmatprep.subr.mxu0 %v3219_v3  ;;  %v2135_v1 = vld [vmem:[%s3608_s9] sm:$0xff] }
 0x494   : > { %2808 = vmatmul.mubr.msk.f32.vlgmr.msra.gmra.mxu0 %vm1133_vm3, %v1613_v2  ;;  %v2227_v2 = vld [vmem:[%s3594_s26 + $0x38] sm:$0xff] }
 0x495   : > { %2817 = vmatprep.mubr.msk.f32.mxu0 %vm3220_vm2, %v3219_v3 }
 0x4dc   : > { %v1608_v4 = vpop.f32.mrf.mxu1 }
 0x4de   : > { %v2804_v5 = vpop.f32.mrf.mxu1 }
 0x4df   : > { %v2225_v5 = vld [vmem:[%s3594_s26 + $0x28] sm:$0xff] }
 0x550   : > { %v1535_v6 = vpop.f32.mrf.mxu0 }
 0x551   : > { %v1609_v38 = vadd.f32 %v1608_v4, %v1535_v6  ;;  %v2226_v4 = vld [vmem:[%s3594_s26 + $0x30] sm:$0xff]  ;;  %v2224_v6 = vld [vmem:[%s3594_s26 + $0x20] sm:$0xff] }
 0x552   : > { %v2799_v7 = vpop.f32.mrf.mxu0 }
 0x553   : > { %v2223_v7 = vld [vmem:[%s3594_s26 + $0x18] sm:$0xff] }
 0x554   : > { %v1686_v8 = vpop.f32.mrf.mxu0 }
 0x555   : > { %v1690_v9 = vsel %vm1133_vm3, %v1686_v8, -inf }
 0x556   : > { %1691 = vmax.xlane.f32.xlu1 %v1690_v9  ;;  %v2809_v11 = vpop.f32.mrf.mxu0 }
 0x5df   : > { %v1692_v12 = vpop.xlane.xlu1 %1691 }
 0x5e0   : > { %v1693_v13 = vsub.f32 %v1686_v8, %v1692_v12 }
 0x5e2   : > { %v1694_v14 = vmul.f32 1.442695, %v1693_v13  ;;  %v2670_v13 = vld [vmem:[%s3999_s6] ss:$0 sm:$0xff] }
 0x5e4   : > { %2992 = vpow2.f32 %v1694_v14 }
 0x5f1   : > { %v2993_v15 = vpop.eup %2992 }
 0x5f2   : > { %v1696_v16 = vsel %vm1133_vm3, %v2993_v15, 0.0 }
 0x5f3   : > { %1697 = vadd.xlane.f32.xlu0 %v1696_v16 }
 0x609   : > { %1704 = vrot.lane.b32.xlu0 %v3690_v26, %s3222_s14 }
 0x60d   : > { %1856 = vrot.lane.b32.xlu0 %v3670_v20, %s3223_s19 }
 0x611   : > { %1854 = vrot.lane.b32.xlu0 %v3672_v23, %s3223_s19  ;;  %v895_v23 = vld [vmem:[%s3995_s17 + $0x10] sm:$0xff] }
 0x612   : > { %2816 = vmatpush3.msra.mxu0 %v895_v23  ;;  %v2674_v23 = vld [vmem:[%s866_s18] ss:$0 sm:$0xff] }
 0x613   : > { %2825 = vmatprep.subr.mxu0 %v3219_v3 }
 0x67c   : > { %v1698_v17 = vpop.xlane.xlu0 %1697 }
 0x67d   : > { %2994 = vrcp.f32 %v1698_v17 }
 0x680   : > { %v1705_v18 = vpop.permute.xlu0 %1704 }
 0x681   : > { %2811 = vmatpush3.msra.mxu1 %v1705_v18  ;;  %v2222_v18 = vld [vmem:[%s3594_s26 + $0x10] sm:$0xff] }
 0x682   : > { %2820 = vmatprep.subr.mxu1 %v3219_v3 }
 0x684   : > { %v1857_v25 = vpop.permute.xlu0 %1856 }
 0x688   : > { %v1855_v20 = vpop.permute.xlu0 %1854 }
 0x68a   : > { %v2995_v19 = vpop.eup %2994 }
 0x68b   : > { %v1700_v21 = vmul.f32 %v2995_v19, %v1698_v17 }
 0x68d   : > { %v1701_v22 = vsub.f32 2.0, %v1700_v21  ;;  %v2220_v21 = vld [vmem:[%s3594_s26] sm:$0xff] }
 0x68f   : > { %v1702_v24 = vmul.f32 %v2995_v19, %v1701_v22  ;;  %v2221_v19 = vld [vmem:[%s3594_s26 + $0x8] sm:$0xff]  ;;  %v2672_v22 = vld [vmem:[%s858_s13] ss:$0 sm:$0xff] }
 0x691   : > { %v1703_v27 = vmul.f32 %v2993_v15, %v1702_v24  ;;  %v2671_v15 = vld [vmem:[%s4001_s24] ss:$0 sm:$0xff] }
 0x693   : > { %2813 = vmatmul.mubr.msk.f32.vlgmr.msra.gmra.mxu1 %vm1133_vm3, %v1703_v27 }
 0x694   : > { %2821 = vmatpush3.xpose.msk.msra.mxu1 %vm1133_vm3, %v1857_v25  ;;  %2822 = vmatprep.mubr.msk.f32.mxu1 %vm3220_vm2, %v3219_v3 }
 0x695   : > { %2830 = vmatprep.subr.mxu1 %v3219_v3 }
 0x697   : > { %2823 = vmatmul.mubr.msk.f32.vlgmr.msra.gmra.mxu1 %vm1133_vm3, %v1855_v20 }
 0x698   : > { %2832 = vmatprep.mubr.msk.f32.mxu1 %vm3220_vm2, %v3219_v3  ;;  %2831 = vmatpush3.msra.mxu1 %v896_v42 }
 0x699   : > { %2846 = vmatprep.subr.mxu1 %v3219_v3 }
 0x753   : > { %v1776_v28 = vpop.f32.mrf.mxu1 }
 0x754   : > { %2818 = vmatmul.mubr.msk.f32.vlgmr.msra.gmra.mxu0 %vm1133_vm3, %v1776_v28 }
 0x755   : > { %v2814_v29 = vpop.f32.mrf.mxu1  ;;  %2827 = vmatprep.mubr.msk.f32.mxu0 %vm3220_vm2, %v3219_v3 }
 0x757   : > { %v1928_v30 = vpop.f32.mrf.mxu1 }
 0x758   : > { %v1932_v31 = vsel %vm1133_vm3, %v1928_v30, -inf }
 0x759   : > { %1933 = vmax.xlane.f32.xlu0 %v1932_v31  ;;  %v2824_v32 = vpop.f32.mrf.mxu1 }
 0x7e2   : > { %v1934_v33 = vpop.xlane.xlu0 %1933 }
 0x7e3   : > { %v1935_v34 = vsub.f32 %v1928_v30, %v1934_v33 }
 0x7e5   : > { %v1936_v35 = vmul.f32 1.442695, %v1935_v34 }
 0x7e7   : > { %2996 = vpow2.f32 %v1936_v35 }
 0x7f4   : > { %v2997_v36 = vpop.eup %2996 }
 0x7f5   : > { %v1938_v37 = vsel %vm1133_vm3, %v2997_v36, 0.0 }
 0x7f6   : > { %1939 = vadd.xlane.f32.xlu1 %v1938_v37 }
 0x807   : > { %1946 = vrot.lane.b32.xlu1 %v3690_v26, %s3223_s19 }
 0x814   : > { %v1849_v39 = vpop.f32.mrf.mxu0 }
 0x815   : > { %v1853_v40 = vadd.f32 %v1849_v39, %v1609_v38 }
 0x816   : > { %v2819_v41 = vpop.f32.mrf.mxu0 }
 0x817   : > { %v2676_v41 = vld [vmem:[%s869_s27] ss:$0 sm:$0xff] }
 0x87f   : > { %v1940_v43 = vpop.xlane.xlu1 %1939 }
 0x880   : > { %2998 = vrcp.f32 %v1940_v43 }
 0x883   : > { %v1947_v44 = vpop.permute.xlu1 %1946 }
 0x884   : > { %2826 = vmatpush3.msra.mxu0 %v1947_v44 }
 0x885   : > { %2835 = vmatprep.subr.mxu0 %v3219_v3 }
 0x88d   : > { %v2999_v45 = vpop.eup %2998 }
 0x88e   : > { %v1942_v46 = vmul.f32 %v2999_v45, %v1940_v43  ;;  %v2677_v43 = vld [vmem:[%s872_s20] ss:$0 sm:$0xff] }
 0x890   : > { %v1943_v47 = vsub.f32 2.0, %v1942_v46 }
 0x892   : > { %v1944_v48 = vmul.f32 %v2999_v45, %v1943_v47 }
 0x894   : > { %v1945_v26 = vmul.f32 %v2997_v36, %v1944_v48 }
 0x896   : > { %2828 = vmatmul.mubr.msk.f32.vlgmr.msra.gmra.mxu0 %vm1133_vm3, %v1945_v26 }
 0x897   : > { %2843 = vmatprep.mubr.msk.f32.mxu0 %vm3220_vm2, %v3219_v3  ;;  %2836 = vmatpush3.msra.mxu0 %v2138_v63 }
 0x898   : > { %2837 = vmatprep.subr.mxu0 %v3219_v3 }
 0x899   : > { %2838 = vmatpush3.msra.mxu0 %v2137_v0 }
 0x89a   : > { %2839 = vmatprep.subr.mxu0 %v3219_v3 }
 0x956   : > { %v2018_v49 = vpop.f32.mrf.mxu0 }
 0x957   : > { %2833 = vmatmul.mubr.msk.f32.vlgmr.msra.gmra.mxu1 %vm1133_vm3, %v2018_v49 }
 0x958   : > { %v2829_v50 = vpop.f32.mrf.mxu0  ;;  %2862 = vmatprep.mubr.msk.f32.mxu1 %vm3220_vm2, %v3219_v3  ;;  %2847 = vmatpush3.msra.mxu1 %v2227_v2 }
 0x959   : > { %2848 = vmatprep.subr.mxu1 %v3219_v3 }
 0x95a   : > { %2849 = vmatpush3.msra.mxu1 %v2226_v4 }
 0x95b   : > { %2850 = vmatprep.subr.mxu1 %v3219_v3 }
 0x95c   : > { %2851 = vmatpush3.msra.mxu1 %v2225_v5 }
 0x95d   : > { %2852 = vmatprep.subr.mxu1 %v3219_v3 }
 0x95e   : > { %2853 = vmatpush3.msra.mxu1 %v2224_v6 }
 0x95f   : > { %2854 = vmatprep.subr.mxu1 %v3219_v3 }
 0x960   : > { %2855 = vmatpush3.msra.mxu1 %v2223_v7 }
 0x961   : > { %2856 = vmatprep.subr.mxu1 %v3219_v3 }
 0x962   : > { %2857 = vmatpush3.msra.mxu1 %v2222_v18 }
 0x963   : > { %2858 = vmatprep.subr.mxu1 %v3219_v3 }
 0x964   : > { %2859 = vmatpush3.msra.mxu1 %v2221_v19 }
 0x965   : > { %2860 = vmatprep.subr.mxu1 %v3219_v3 }
 0x966   : > { %2861 = vmatpush3.msra.mxu1 %v2220_v21 }
 0xa17   : > { %v2091_v51 = vpop.f32.mrf.mxu1 }
 0xa18   : > { %v2095_v53 = vadd.f32 %v2091_v51, %v1853_v40 }
 0xa19   : > { %v2834_v54 = vpop.f32.mrf.mxu1 }
 0xa1a   : > { %v2103_v55 = vadd.f32 %v2669_v52, %v2095_v53 }
 0xa1c   : > { %v2104_v56 = vadd.f32 %v2103_v55, %v3632_v10  ;;  %v2136_v10 = vld [vmem:[%s3608_s9 + $0x8] sm:$0xff] }
 0xa1d   : > { %2840 = vmatpush3.msra.mxu0 %v2136_v10 }
 0xa1e   : > { %v2105_v57 = vsel %vm904_vm1, %v2104_v56, 0.0  ;;  %2841 = vmatprep.subr.mxu0 %v3219_v3 }
 0xa1f   : > { %2106 = vadd.xlane.f32.xlu1 %v2105_v57  ;;  %2842 = vmatpush3.msra.mxu0 %v2135_v1 }
 0xaa8   : > { %v2107_v58 = vpop.xlane.xlu1 %2106 }
 0xaa9   : > { %v2109_v59 = vmul.f32 0.03125, %v2107_v58 }
 0xaab   : > { %v2110_v60 = vsub.f32 %v2104_v56, %v2109_v59 }
 0xaad   : > { %v2111_v61 = vmul.f32 %v2110_v60, %v2110_v60 }
 0xaaf   : > { %v2112_v62 = vsel %vm904_vm1, %v2111_v61, 0.0 }
 0xab0   : > { %2113 = vadd.xlane.f32.xlu0 %v2112_v62 }
 0xb39   : > { %v2114_v8 = vpop.xlane.xlu0 %2113 }
 0xb3a   : > { %v2115_v9 = vmul.f32 0.03125, %v2114_v8 }
 0xb3c   : > { %v2116_v11 = vadd.f32 1e-05, %v2115_v9 }
 0xb3e   : > { %3000 = vrsqrt.f32 %v2116_v11 }
 0xb4b   : > { %v3001_v12 = vpop.eup %3000 }
 0xb4c   : > { %v2118_v14 = vmul.f32 %v3001_v12, %v2110_v60 }
 0xb4e   : > { %v2126_v16 = vmul.f32 %v2670_v13, %v2118_v14 }
 0xb50   : > { %v2134_v17 = vadd.f32 %v2671_v15, %v2126_v16 }
 0xb52   : > { %2844 = vmatmul.mubr.msk.f32.vlgmr.msra.gmra.mxu0 %vm904_vm1, %v2134_v17 }
 0xc12   : > { %v2215_v24 = vpop.f32.mrf.mxu0 }
 0xc13   : > { %v2216_v25 = vadd.f32 %v2672_v22, %v2215_v24 }
 0xc14   : > { %v2845_v27 = vpop.f32.mrf.mxu0 }
 0xc15   : > { %v2219_v20 = vmax.f32 %v2216_v25, 0.0 }
 0xc17   : > { %2863 = vmatmul.mubr.msk.f32.vlgmr.msra.gmra.mxu1 %vm2235_vm4, %v2219_v20 }
 0xcd7   : > { %v2305_v28 = vpop.f32.mrf.mxu1 }
 0xcd8   : > { %v2306_v29 = vadd.f32 %v2674_v23, %v2305_v28 }
 0xcd9   : > { %v2864_v3 = vpop.f32.mrf.mxu1 }
 0xcda   : > { %v2309_v30 = vadd.f32 %v2306_v29, %v2134_v17 }
 0xcdc   : > { %v2310_v31 = vsel %vm904_vm1, %v2309_v30, 0.0 }
 0xcdd   : > { %2311 = vadd.xlane.f32.xlu0 %v2310_v31 }
 0xd66   : > { %v2312_v32 = vpop.xlane.xlu0 %2311 }
 0xd67   : > { %v2313_v33 = vmul.f32 0.03125, %v2312_v32 }
 0xd69   : > { %v2314_v34 = vsub.f32 %v2309_v30, %v2313_v33 }
 0xd6b   : > { %v2315_v35 = vmul.f32 %v2314_v34, %v2314_v34 }
 0xd6d   : > { %v2316_v36 = vsel %vm904_vm1, %v2315_v35, 0.0 }
 0xd6e   : > { %2317 = vadd.xlane.f32.xlu0 %v2316_v36 }
 0xdf7   : > { %v2318_v37 = vpop.xlane.xlu0 %2317 }
 0xdf8   : > { %v2319_v38 = vmul.f32 0.03125, %v2318_v37 }
 0xdfa   : > { %v2320_v39 = vadd.f32 1e-05, %v2319_v38 }
 0xdfc   : > { %3002 = vrsqrt.f32 %v2320_v39 }
 0xe09   : > { %v3003_v40 = vpop.eup %3002 }
 0xe0a   : > { %v2322_v42 = vmul.f32 %v3003_v40, %v2314_v34 }
 0xe0c   : > { %v2330_v44 = vmul.f32 %v2676_v41, %v2322_v42  ;;  %2343 = sbr.rel (%p2678_p9) target bundleno = 3602 (0xe12), region = 108 }
 0xe0e   : > { %v2338_v45 = vadd.f32 %v2677_v43, %v2330_v44 }
 0xe10   : > { %2339 = vst.msk [vmem:[#allocation2] sm:$0xff] %vm904_vm1, %v2338_v45 }
 0xe11   : > { %2344 = vst.msk [vmem:[%s3612_s29] sm:$0xff] %vm904_vm1, %v2338_v45 }
 0xe12 PF: > { %s4006_s3 = sld [smem:[#allocation18_spill]]  ;;  %s2359_s7 = sshll.u32 %s3612_s29, 4  ;;  %s2360_s7 = int_to_ptr.vmem [resolvable:$true] %s2359_s7 }
 0xe13   : > { %s4007_s27 = sld [smem:[#allocation25_spill]]  ;;  %s2346_s9 = scalar_lea.sflag [#allocation5], %s3522_s4 }
 0xe14   : > { %s4008_s5 = sld [smem:[#allocation45_spill]]  ;;  %s3088_s11 = scalar_lea.vmem %s2360_s7, 128 }
 0xe15   : > { %p3089_p1 = scmp.ne.s32.totalorder %s2360_s7, %s3088_s11  ;;  %s3224_s0 = smov [#allocation9]  }
 0xe16   : > { %s3092_s6 = sshll.u32 %s3224_s0, 4  ;;  %s3093_s6 = int_to_ptr.vmem [resolvable:$false] %s3092_s6 }
 0xe17   : > { %s3094_s22 = scalar_lea.vmem %s3093_s6, 256  ;;  %p3095_p7 = scmp.lt.s32.totalorder %s2360_s7, %s3093_s6 }
 0xe18   : > { %s2680_s23 = sshll.u32 %s4006_s3, 7  ;;  %p3096_p12 = scmp.lt.s32.totalorder %s3094_s22, %s3088_s11 }
 0xe19   : > { %p4009_p5 = scmp.ne.s32.totalorder %s4007_s27, 0 }
 0xe1a   : > { %s2357_s20 = scalar_lea.hbm %s4008_s5, %s2680_s23  ;;  %p3097_p2 = por %p3096_p12, %p3095_p7 }
 0xe1b   : > { %p3090_p10 = pnand %p3089_p1, %p4009_p5 }
 0xe1d   : > { %p3091_p3 = pneg %p3090_p10 }
 0xe1f   : > { %p3098_p8 = pnand %p3097_p2, %p3091_p3 }
 0xe21   : > { %3101 = shalt.err (!%p3098_p8)
}
 0xe22   : > { %s3102_s15 = scalar_lea.hbm %s2357_s20, 128  ;;  %s3106_s30 = scalar_lea.hbm %s4008_s5, 256 }
 0xe23   : > { %p3103_p0 = scmp.ne.s32.totalorder %s2357_s20, %s3102_s15  ;;  %p3107_p4 = scmp.lt.s32.totalorder %s2357_s20, %s4008_s5 }
 0xe24   : > { %p3108_p6 = scmp.lt.s32.totalorder %s3106_s30, %s3102_s15 }
 0xe25   : > { %p3104_p11 = pnand %p3103_p0, %p4009_p5 }
 0xe26   : > { %p3109_p9 = por %p3108_p6, %p3107_p4 }
 0xe27   : > { %p3105_p13 = pneg %p3104_p11 }
 0xe29   : > { %p3110_p1 = pnand %p3109_p9, %p3105_p13 }
 0xe2b   : > { %3113 = shalt.err (!%p3110_p1)
}
 0xe2c   : > { %2871 = dma.vmem_to_hbm [thread:$0]  (%p4009_p5), %s2360_s7, 128, %s2357_s20, %s2346_s9  }
 0xe2d PF: > { %s4010_s16 = sld [smem:[#allocation21_spill]] }
 0xe2e   : > { %s4011_s21 = sld [smem:[#allocation15_spill]] }
 0xe2f   : > { %s4012_s12 = sld [smem:[#allocation27_spill]] }
 0xe33   : > { %p2888_p10 = scmp.ge.s32.totalorder %s4010_s16, 2 }
 0xe34   : > { %s2371_s28 = sand.u32 1, %s4011_s21  }
 0xe35   : > { %p4013_p3 = scmp.ne.s32.totalorder %s4012_s12, 0  ;;  %s2372_s25 = scalar_lea.sflag [#allocation5], %s2371_s28 }
 0xe37   : > { %p2884_p7 = pnand %p2888_p10, %p4013_p3 }
 0xe39   : > { %p2885_p12 = pneg %p2884_p7 }
 0xe3b   : > { %3167 = dma.done.wait (%p2885_p12), %s2372_s25, 128  }
 0xe3c   : > { %3169 = vsyncadd (%p2885_p12), %s2372_s25, 4294967168  ;;  %s36_s1 = sadd.s32 1, %s4010_s16   ;;  %s4014_s24 = sld [smem:[#allocation13_spill]] }
 0xe3d   : > { %p33_p2 = scmp.ge.s32.totalorder %s36_s1, 6   ;;  %s4015_s25 = sld [smem:[#allocation14_spill]] }
 0xe3e   : > { %s4016_s26 = sld [smem:[#allocation23_spill]] }
 0xe3f   : > { %s4017_s27 = sld [smem:[#allocation16_spill]] }
 0xe40   : > { %s4018_s28 = sld [smem:[#allocation17_spill]] }
 0xe41   : > { %s4019_s29 = sld [smem:[#allocation26_spill]]  ;;  %35 = sbr.rel (!%p33_p2) target bundleno = 29 (0x1d), region = 207 }
 0xe42   : > { %s4020_s0 = sld [smem:[#allocation19_spill]] }
 0xe43   : > { %s4021_s30 = sld [smem:[#allocation20_spill]] }
 0xe44   : > { %s4022_s18 = sld [smem:[#allocation22_spill]] }
 0xe45   : > { %s4023_s19 = sld [smem:[#allocation24_spill]] }
 0xe46   :  { %2377 = vsyncpa [#allocation4], 1 }
 0xe47   :  { %2379 = vsyncpa [#allocation4 + $0x1], 1 }
 0xe48   :  { %2380 = vsyncpa [#allocation7], 1 }
 0xe49   :  { %2382 = vsyncpa [#allocation7 + $0x1], 1 }
 0xe4a   :  { %2383 = vsyncpa [#allocation5], 1 }
 0xe4b   :  { %2385 = vsyncpa [#allocation5 + $0x1], 1 }

</bundles_post_ra>
